<compile_context>
chip_gen: v7x
topology: tpu7x:2x2x1
jax: 0.10.0
libtpu: 0.0.40
codegen_flags: <defaults>
</compile_context>

<pallas_src>
import jax
import jax.numpy as jnp
from jax import lax
from jax.experimental import pallas as pl
from jax.experimental.pallas import tpu as pltpu

SLOPE = 0.01  # nn.LeakyReLU default negative_slope

_VMEM = pl.BlockSpec(memory_space=pltpu.MemorySpace.VMEM)


def _leaky(x):
    return jnp.where(x > 0, x, SLOPE * x)


def _sigmoid_pair(d):
    # softmax over 2 classes: softmax([z0,z1]) = [sigmoid(d), sigmoid(-d)], d = z0-z1.
    # One exp (EUP slot) + one approx reciprocal, single full-width store by caller.
    e = jnp.exp(jnp.concatenate([-d, d], axis=1))
    return pl.reciprocal(1.0 + e, approx=True)


def _cparams(semantics, footprint_bytes):
    # Explicit scoped-VMEM request sized to the footprint (clamped to a safe range).
    limit = int(min(max(4 * int(footprint_bytes) + (16 << 20), 32 << 20), 64 << 20))
    return pltpu.CompilerParams(dimension_semantics=semantics,
                                vmem_limit_bytes=limit)


# --------------------- phase 1: lin_in + encoder + scatter(encoded -> dst) ---------------------
def _encode_scatter_kernel(dst_ref, x_ref, h_msg_ref, w_in_ref, b_in_ref,
                           w_enc_ref, b_enc_ref, h_node_ref, aggr_msgs_ref):
    @pl.when(pl.program_id(0) == 0)
    def _():
        h_node_ref[...] = (jnp.dot(x_ref[...], w_in_ref[...],
                                   preferred_element_type=jnp.float32) + b_in_ref[...])
        aggr_msgs_ref[...] = jnp.zeros_like(aggr_msgs_ref)

    n_nodes = aggr_msgs_ref.shape[0]
    te = h_msg_ref.shape[0]
    # encoded_msg for this edge tile (bf16 MXU, f32 accumulate)
    encoded = (jnp.dot(h_msg_ref[...].astype(jnp.bfloat16), w_enc_ref[...],
                       preferred_element_type=jnp.float32) + b_enc_ref[...])     # [te, H]
    # transpose-free scatter-add over destination nodes, bf16 one-hot
    dst_ohT = (lax.broadcasted_iota(jnp.int32, (n_nodes, te), 0)
               == dst_ref[...]).astype(jnp.bfloat16)                             # [N, te]
    aggr_msgs_ref[...] += jnp.dot(dst_ohT, encoded.astype(jnp.bfloat16),
                                  preferred_element_type=jnp.float32)


# --------- phase 2: per-edge message MLPs + msg decoder + scatter(aggr_msg -> dst) --------------
def _message_kernel(src_ref, dst_ref, h_msg_ref, nodef_ref,
                    w_encp_ref, b_encp_ref, w_blk1_ref, b_blk1_ref,
                    w_blk2_ref, b_blk2_ref, w_dec_ref, b_dec_ref,
                    h_msg_out_ref, y_msg_ref, aggr_out_ref):
    te, H = h_msg_ref.shape
    n_nodes = nodef_ref.shape[0]

    @pl.when(pl.program_id(1) == 0)
    def _():
        aggr_out_ref[...] = jnp.zeros_like(aggr_out_ref)

    # encoded_msg padded to [te, 2H] = [0 | encoded] via zero-padded weight (no lane concat)
    enc_pad = (jnp.dot(h_msg_ref[...].astype(jnp.bfloat16), w_encp_ref[...],
                       preferred_element_type=jnp.float32) + b_encp_ref[...])    # [te, 2H]
    # fused source gather: one MXU pass produces [h_node_j | aggr_msgs_j]
    src_oh = (lax.broadcasted_iota(jnp.int32, (te, n_nodes), 1)
              == src_ref[...]).astype(jnp.bfloat16)                              # [te, N]
    gathered = jnp.dot(src_oh, nodef_ref[...],
                       preferred_element_type=jnp.float32)                       # [te, 2H]
    z = gathered - enc_pad            # [h_node_j | aggr_msgs_j - encoded_msg]
    # block-diagonal MLP = N_node(.) on the first half, N(.) on the second half
    z = _leaky(jnp.dot(z.astype(jnp.bfloat16), w_blk1_ref[...],
                       preferred_element_type=jnp.float32) + b_blk1_ref[...])
    z = _leaky(jnp.dot(z.astype(jnp.bfloat16), w_blk2_ref[...],
                       preferred_element_type=jnp.float32) + b_blk2_ref[...])
    aggr_msg = z[:, :H] + z[:, H:]    # N_node(h_j) + N(aggr_msgs_j - encoded)   [te, H]
    h_msg_out_ref[...] = aggr_msg

    # MessageDecoderLayer (2-class softmax, single full-width store)
    zmsg = (jnp.dot(aggr_msg, w_dec_ref[...], preferred_element_type=jnp.float32)
            + b_dec_ref[...])                                                    # [te, 2]
    y_msg_ref[...] = _sigmoid_pair(zmsg[:, 0:1] - zmsg[:, 1:2])

    # per-parallel-shard partial scatter-add of aggr_msg over destination nodes
    dst_ohT = (lax.broadcasted_iota(jnp.int32, (n_nodes, te), 0)
               == dst_ref[...]).astype(jnp.bfloat16)                             # [N, te]
    aggr_out_ref[...] += jnp.dot(dst_ohT, aggr_msg.astype(jnp.bfloat16),
                                 preferred_element_type=jnp.float32)[None]


# --------------------- phase 3: node update U + BeliefsDecoderLayer ----------------------------
def _update_beliefs_kernel(h_node_ref, aggr_part_ref, w_u_ref, b_u_ref,
                           w_bel_ref, b_bel_ref, beliefs_ref):
    aggr_out = jnp.sum(aggr_part_ref[...], axis=0)                               # [N, H]
    cat = jnp.concatenate([h_node_ref[...], aggr_out], axis=1)                   # [N, 2H]
    h_new = _leaky(jnp.dot(cat, w_u_ref[...], preferred_element_type=jnp.float32)
                   + b_u_ref[...])                                               # [N, H]
    z = (jnp.dot(h_new, w_bel_ref[...], preferred_element_type=jnp.float32)
         + b_bel_ref[...])                                                       # [N, 2]
    beliefs_ref[...] = _sigmoid_pair(z[:, 0:1] - z[:, 1:2])


# ----------------------------------- forward wrapper -------------------------------------------
def mpnn_s2v_loop_forward(params, x, src_col, dst_row, h_msg, var_idx):
    N, x_dim = x.shape
    E, H = h_msg.shape
    f32, bf16 = jnp.float32, jnp.bfloat16

    # Edge tiling: 128-wide lane-friendly tiles when E allows, else one whole-E tile.
    TE = 128 if E % 128 == 0 else E
    n_tiles = E // TE
    P = 2 if n_tiles % 2 == 0 else 1          # megacore sharding of the edge axis (v7x)
    TPP = n_tiles // P

    # ---- derived / packed weights (computed once per call; constant-folded under jit) ----
    zH = jnp.zeros((H, H), f32)
    w_enc_bf = params["w_enc"].astype(bf16)
    w_enc_pad = jnp.concatenate([zH, params["w_enc"]], axis=1).astype(bf16)       # [H, 2H]
    b_enc_pad = jnp.concatenate([jnp.zeros((1, H), f32), params["b_enc"]], axis=1)
    w_blk1 = jnp.concatenate(
        [jnp.concatenate([params["w_nn1"], zH], axis=1),
         jnp.concatenate([zH, params["w_n1"]], axis=1)], axis=0).astype(bf16)     # [2H, 2H]
    b_blk1 = jnp.concatenate([params["b_nn1"], params["b_n1"]], axis=1)
    w_blk2 = jnp.concatenate(
        [jnp.concatenate([params["w_nn2"], zH], axis=1),
         jnp.concatenate([zH, params["w_n2"]], axis=1)], axis=0).astype(bf16)
    b_blk2 = jnp.concatenate([params["b_nn2"], params["b_n2"]], axis=1)

    # ---------------- phase 1 ----------------
    h_node, aggr_msgs = pl.pallas_call(
        _encode_scatter_kernel,
        out_shape=(jax.ShapeDtypeStruct((N, H), f32),
                   jax.ShapeDtypeStruct((N, H), f32)),
        grid=(n_tiles,),
        in_specs=[
            pl.BlockSpec((1, TE), lambda i: (0, i)),        # dst_row
            pl.BlockSpec((N, x_dim), lambda i: (0, 0)),     # x
            pl.BlockSpec((TE, H), lambda i: (i, 0)),        # h_msg
            pl.BlockSpec((x_dim, H), lambda i: (0, 0)),     # w_in
            pl.BlockSpec((1, H), lambda i: (0, 0)),         # b_in
            pl.BlockSpec((H, H), lambda i: (0, 0)),         # w_enc (bf16)
            pl.BlockSpec((1, H), lambda i: (0, 0)),         # b_enc
        ],
        out_specs=(pl.BlockSpec((N, H), lambda i: (0, 0)),
                   pl.BlockSpec((N, H), lambda i: (0, 0))),
        compiler_params=_cparams(("arbitrary",),
                                 2 * N * TE * 2 + 6 * TE * H * 4 + 2 * N * H * 4),
    )(dst_row, x, h_msg, params["w_in"], params["b_in"], w_enc_bf, params["b_enc"])

    # bf16 gather operand [h_node | aggr_msgs] built ONCE (lane-dense 2H=64 wide)
    node_feats = jnp.concatenate([h_node, aggr_msgs], axis=1).astype(bf16)        # [N, 2H]

    # ---------------- phase 2 ----------------
    def _e_map(p, t):
        return (p * TPP + t, 0)

    def _eT_map(p, t):
        return (0, p * TPP + t)

    def _full(p, t):
        return (0, 0)

    h_msg_out, y_msg, aggr_partial = pl.pallas_call(
        _message_kernel,
        out_shape=(jax.ShapeDtypeStruct((E, H), f32),
                   jax.ShapeDtypeStruct((E, 2), f32),
                   jax.ShapeDtypeStruct((P, N, H), f32)),
        grid=(P, TPP),
        in_specs=[
            pl.BlockSpec((TE, 1), _e_map),           # src_col
            pl.BlockSpec((1, TE), _eT_map),          # dst_row
            pl.BlockSpec((TE, H), _e_map),           # h_msg (aliased to h_msg_out)
            pl.BlockSpec((N, 2 * H), _full),         # node_feats (bf16)
            pl.BlockSpec((H, 2 * H), _full),         # w_enc_pad (bf16)
            pl.BlockSpec((1, 2 * H), _full),         # b_enc_pad
            pl.BlockSpec((2 * H, 2 * H), _full),     # w_blk1 (bf16)
            pl.BlockSpec((1, 2 * H), _full),         # b_blk1
            pl.BlockSpec((2 * H, 2 * H), _full),     # w_blk2 (bf16)
            pl.BlockSpec((1, 2 * H), _full),         # b_blk2
            pl.BlockSpec((H, 2), _full),             # w_dec
            pl.BlockSpec((1, 2), _full),             # b_dec
        ],
        out_specs=(pl.BlockSpec((TE, H), _e_map),
                   pl.BlockSpec((TE, 2), _e_map),
                   pl.BlockSpec((1, N, H), lambda p, t: (p, 0, 0))),
        input_output_aliases={2: 0},                 # update message state in place
        compiler_params=_cparams(("parallel", "arbitrary"),
                                 4 * N * TE * 2 + 8 * TE * 2 * H * 4
                                 + N * 2 * H * 2 + P * N * H * 4),
    )(src_col, dst_row, h_msg, node_feats,
      w_enc_pad, b_enc_pad, w_blk1, b_blk1, w_blk2, b_blk2,
      params["w_dec"], params["b_dec"])

    # ---------------- phase 3 ----------------
    beliefs_all = pl.pallas_call(
        _update_beliefs_kernel,
        out_shape=jax.ShapeDtypeStruct((N, 2), f32),
        in_specs=[_VMEM] * 6,
        out_specs=_VMEM,
        compiler_params=_cparams(None, (P + 6) * N * H * 4),
    )(h_node, aggr_partial, params["w_u"], params["b_u"],
      params["w_bel"], params["b_bel"])

    # BeliefsDecoderLayer mask (x[:,0]==1) is row-wise -> select variable rows in JAX glue.
    y_beliefs = beliefs_all[var_idx]
    return h_msg_out, y_msg, y_beliefs


# --------------------------------------- params -------------------------------------------------
def init_linear(key, in_dim, out_dim):
    k1, k2 = jax.random.split(key)
    bound = 1.0 / (in_dim ** 0.5)
    w = jax.random.uniform(k1, (in_dim, out_dim), jnp.float32, -bound, bound)
    b = jax.random.uniform(k2, (1, out_dim), jnp.float32, -bound, bound)
    return w, b


def init_params(key, x_dim=3, h_dim=32, msg_dim=2, beliefs_dim=2):
    ks = jax.random.split(key, 9)
    w_in, b_in = init_linear(ks[0], x_dim, h_dim)
    w_enc, b_enc = init_linear(ks[1], h_dim, h_dim)        # LoopEncoderLayer.lin
    w_nn1, b_nn1 = init_linear(ks[2], h_dim, h_dim)        # processor.N_node[0]
    w_nn2, b_nn2 = init_linear(ks[3], h_dim, h_dim)        # processor.N_node[2]
    w_n1, b_n1 = init_linear(ks[4], h_dim, h_dim)          # processor.N[0]
    w_n2, b_n2 = init_linear(ks[5], h_dim, h_dim)          # processor.N[2]
    w_u, b_u = init_linear(ks[6], 2 * h_dim, h_dim)        # processor.U[0]
    w_dec, b_dec = init_linear(ks[7], h_dim, msg_dim)      # MessageDecoderLayer.lin
    w_bel, b_bel = init_linear(ks[8], h_dim, beliefs_dim)  # BeliefsDecoderLayer.lin
    # processor.M is defined in __init__ but never used in forward -> omitted.
    return dict(w_in=w_in, b_in=b_in, w_enc=w_enc, b_enc=b_enc,
                w_nn1=w_nn1, b_nn1=b_nn1, w_nn2=w_nn2, b_nn2=b_nn2,
                w_n1=w_n1, b_n1=b_n1, w_n2=w_n2, b_n2=b_n2,
                w_u=w_u, b_u=b_u, w_dec=w_dec, b_dec=b_dec,
                w_bel=w_bel, b_bel=b_bel)


# ----------------------------------------- demo --------------------------------------------------
if __name__ == "__main__":
    N, E = 64, 256                # nodes, directed edges (2 edge tiles of 128 -> exercises grid)
    X_DIM, H_DIM, MSG_DIM = 3, 32, 2
    N_VAR = 32                    # nodes with x[:, 0] == 1

    key = jax.random.PRNGKey(0)
    kp, kx, ke1, ke2, kh = jax.random.split(key, 5)

    params = init_params(kp, X_DIM, H_DIM, MSG_DIM)

    # data.x: first N_VAR nodes are "variable" nodes (x[:,0]==1)
    x_rest = jax.random.normal(kx, (N, X_DIM - 1), jnp.float32)
    x_flag = (jnp.arange(N) < N_VAR).astype(jnp.float32)[:, None]
    x = jnp.concatenate([x_flag, x_rest], axis=1)                   # [N, 3]

    # data.edge_index: row 0 = source (j), row 1 = target (i)
    src = jax.random.randint(ke1, (E,), 0, N, jnp.int32)
    dst = jax.random.randint(ke2, (E,), 0, N, jnp.int32)
    src_col = src[:, None]                                          # [E, 1] for gather one-hot
    dst_row = dst[None, :]                                          # [1, E] for scatter one-hot

    h_msg = jax.random.normal(kh, (E, H_DIM), jnp.float32)          # [E, 32]
    var_idx = jnp.arange(N_VAR)                                     # rows where x[:,0]==1

    fwd = jax.jit(mpnn_s2v_loop_forward)
    h_msg_out, y_msg_out, y_beliefs = fwd(params, x, src_col, dst_row, h_msg, var_idx)
    jax.block_until_ready((h_msg_out, y_msg_out, y_beliefs))

    assert h_msg_out.shape == (E, H_DIM)
    assert y_msg_out.shape == (E, MSG_DIM)
    assert y_beliefs.shape == (N_VAR, 2)
    assert bool(jnp.isfinite(h_msg_out).all())
    assert bool(jnp.isfinite(y_msg_out).all())
    assert bool(jnp.isfinite(y_beliefs).all())
    print("KERNEL_OK")
</pallas_src>

<mosaic_0001>
module attributes {stable_mosaic.version = 11 : i64} {
  func.func @_encode_scatter_kernel(%arg0: i32, %arg1: memref<1x128xi32, #tpu.memory_space<vmem>>, %arg2: memref<64x3xf32, #tpu.memory_space<vmem>>, %arg3: memref<128x32xf32, #tpu.memory_space<vmem>>, %arg4: memref<3x32xf32, #tpu.memory_space<vmem>>, %arg5: memref<1x32xf32, #tpu.memory_space<vmem>>, %arg6: memref<32x32xbf16, #tpu.memory_space<vmem>>, %arg7: memref<1x32xf32, #tpu.memory_space<vmem>>, %arg8: memref<64x32xf32, #tpu.memory_space<vmem>>, %arg9: memref<64x32xf32, #tpu.memory_space<vmem>>) attributes {dimension_semantics = [#tpu.dimension_semantics<arbitrary>], iteration_bounds = array<i64: 2>, scalar_prefetch = 0 : i64, scratch_operands = 0 : i64, tpu.core_type = #tpu.core_type<tc>, window_params = [{transform_indices = @transform_0, window_bounds = array<i64: 1, 128>}, {pipeline_mode = #tpu.pipeline_mode<synchronous>, transform_indices = @transform_1, window_bounds = array<i64: 64, 3>}, {transform_indices = @transform_2, window_bounds = array<i64: 128, 32>}, {pipeline_mode = #tpu.pipeline_mode<synchronous>, transform_indices = @transform_3, window_bounds = array<i64: 3, 32>}, {pipeline_mode = #tpu.pipeline_mode<synchronous>, transform_indices = @transform_4, window_bounds = array<i64: 1, 32>}, {pipeline_mode = #tpu.pipeline_mode<synchronous>, transform_indices = @transform_5, window_bounds = array<i64: 32, 32>}, {pipeline_mode = #tpu.pipeline_mode<synchronous>, transform_indices = @transform_6, window_bounds = array<i64: 1, 32>}, {pipeline_mode = #tpu.pipeline_mode<synchronous>, transform_indices = @transform_7, window_bounds = array<i64: 64, 32>}, {pipeline_mode = #tpu.pipeline_mode<synchronous>, transform_indices = @transform_8, window_bounds = array<i64: 64, 32>}]} {
    %c0_i32 = arith.constant 0 : i32
    %0 = arith.cmpi eq, %arg0, %c0_i32 : i32
    %1 = arith.extui %0 : i1 to i32
    %c0_i32_0 = arith.constant 0 : i32
    %2 = arith.cmpi ne, %1, %c0_i32_0 : i32
    scf.if %2 {
      %c0_13 = arith.constant 0 : index
      %c0_14 = arith.constant 0 : index
      %22 = vector.load %arg2[%c0_13, %c0_14] : memref<64x3xf32, #tpu.memory_space<vmem>>, vector<64x3xf32>
      %c0_15 = arith.constant 0 : index
      %c0_16 = arith.constant 0 : index
      %23 = vector.load %arg4[%c0_15, %c0_16] : memref<3x32xf32, #tpu.memory_space<vmem>>, vector<3x32xf32>
      %cst_17 = arith.constant dense<0.000000e+00> : vector<64x32xf32>
      %24 = tpu.matmul %22, %23, %cst_17 {dimension_numbers = #tpu.dot_dimension_numbers<[1], [0], [0], [1], [0, 0, 1, 1], [], []>} : vector<64x3xf32>, vector<3x32xf32>, vector<64x32xf32> -> vector<64x32xf32>
      %c0_18 = arith.constant 0 : index
      %c0_19 = arith.constant 0 : index
      %25 = vector.load %arg5[%c0_18, %c0_19] : memref<1x32xf32, #tpu.memory_space<vmem>>, vector<1x32xf32>
      %26 = vector.broadcast %25 : vector<1x32xf32> to vector<64x32xf32>
      %27 = arith.addf %24, %26 : vector<64x32xf32>
      %c0_20 = arith.constant 0 : index
      %c0_21 = arith.constant 0 : index
      %28 = vector.load %arg8[%c0_20, %c0_21] : memref<64x32xf32, #tpu.memory_space<vmem>>, vector<64x32xf32>
      tpu.vector_store %arg8[%c0_20, %c0_21], %27 {strides = array<i32>} : memref<64x32xf32, #tpu.memory_space<vmem>>, vector<64x32xf32>,
      %cst_22 = arith.constant 0.000000e+00 : f32
      %29 = vector.broadcast %cst_22 : f32 to vector<64x32xf32>
      %c0_23 = arith.constant 0 : index
      %c0_24 = arith.constant 0 : index
      %30 = vector.load %arg9[%c0_23, %c0_24] : memref<64x32xf32, #tpu.memory_space<vmem>>, vector<64x32xf32>
      tpu.vector_store %arg9[%c0_23, %c0_24], %29 {strides = array<i32>} : memref<64x32xf32, #tpu.memory_space<vmem>>, vector<64x32xf32>,
    } else {
    }
    %c0 = arith.constant 0 : index
    %c0_1 = arith.constant 0 : index
    %3 = vector.load %arg3[%c0, %c0_1] : memref<128x32xf32, #tpu.memory_space<vmem>>, vector<128x32xf32>
    %4 = arith.truncf %3 : vector<128x32xf32> to vector<128x32xbf16>
    %c0_2 = arith.constant 0 : index
    %c0_3 = arith.constant 0 : index
    %5 = vector.load %arg6[%c0_2, %c0_3] : memref<32x32xbf16, #tpu.memory_space<vmem>>, vector<32x32xbf16>
    %cst = arith.constant dense<0.000000e+00> : vector<128x32xf32>
    %6 = tpu.matmul %4, %5, %cst {dimension_numbers = #tpu.dot_dimension_numbers<[1], [0], [0], [1], [0, 0, 1, 1], [], []>} : vector<128x32xbf16>, vector<32x32xbf16>, vector<128x32xf32> -> vector<128x32xf32>
    %c0_4 = arith.constant 0 : index
    %c0_5 = arith.constant 0 : index
    %7 = vector.load %arg7[%c0_4, %c0_5] : memref<1x32xf32, #tpu.memory_space<vmem>>, vector<1x32xf32>
    %8 = vector.broadcast %7 : vector<1x32xf32> to vector<128x32xf32>
    %9 = arith.addf %6, %8 : vector<128x32xf32>
    %10 = tpu.iota {dimensions = array<i32: 0>} : vector<64x128xi32>
    %c0_6 = arith.constant 0 : index
    %c0_7 = arith.constant 0 : index
    %11 = vector.load %arg1[%c0_6, %c0_7] : memref<1x128xi32, #tpu.memory_space<vmem>>, vector<1x128xi32>
    %12 = vector.broadcast %11 : vector<1x128xi32> to vector<64x128xi32>
    %13 = arith.cmpi eq, %10, %12 : vector<64x128xi32>
    %14 = arith.extui %13 : vector<64x128xi1> to vector<64x128xi32>
    %15 = arith.sitofp %14 : vector<64x128xi32> to vector<64x128xf32>
    %16 = arith.truncf %15 : vector<64x128xf32> to vector<64x128xbf16>
    %c0_8 = arith.constant 0 : index
    %c0_9 = arith.constant 0 : index
    %17 = vector.load %arg9[%c0_8, %c0_9] : memref<64x32xf32, #tpu.memory_space<vmem>>, vector<64x32xf32>
    %18 = arith.truncf %9 : vector<128x32xf32> to vector<128x32xbf16>
    %cst_10 = arith.constant dense<0.000000e+00> : vector<64x32xf32>
    %19 = tpu.matmul %16, %18, %cst_10 {dimension_numbers = #tpu.dot_dimension_numbers<[1], [0], [0], [1], [0, 0, 1, 1], [], []>} : vector<64x128xbf16>, vector<128x32xbf16>, vector<64x32xf32> -> vector<64x32xf32>
    %20 = arith.addf %17, %19 : vector<64x32xf32>
    %c0_11 = arith.constant 0 : index
    %c0_12 = arith.constant 0 : index
    %21 = vector.load %arg9[%c0_11, %c0_12] : memref<64x32xf32, #tpu.memory_space<vmem>>, vector<64x32xf32>
    tpu.vector_store %arg9[%c0_11, %c0_12], %20 {strides = array<i32>} : memref<64x32xf32, #tpu.memory_space<vmem>>, vector<64x32xf32>,
    return
  }
  func.func @transform_0(%arg0: i32) -> (i32, i32) {
    %c0_i32 = arith.constant 0 : i32
    %c0_i32_0 = arith.constant 0 : i32
    return %c0_i32, %arg0 : i32, i32
  }
  func.func @transform_1(%arg0: i32) -> (i32, i32) {
    %c0_i32 = arith.constant 0 : i32
    %c0_i32_0 = arith.constant 0 : i32
    %c0_i32_1 = arith.constant 0 : i32
    return %c0_i32, %c0_i32_0 : i32, i32
  }
  func.func @transform_2(%arg0: i32) -> (i32, i32) {
    %c0_i32 = arith.constant 0 : i32
    %c0_i32_0 = arith.constant 0 : i32
    return %arg0, %c0_i32 : i32, i32
  }
  func.func @transform_3(%arg0: i32) -> (i32, i32) {
    %c0_i32 = arith.constant 0 : i32
    %c0_i32_0 = arith.constant 0 : i32
    %c0_i32_1 = arith.constant 0 : i32
    return %c0_i32, %c0_i32_0 : i32, i32
  }
  func.func @transform_4(%arg0: i32) -> (i32, i32) {
    %c0_i32 = arith.constant 0 : i32
    %c0_i32_0 = arith.constant 0 : i32
    %c0_i32_1 = arith.constant 0 : i32
    return %c0_i32, %c0_i32_0 : i32, i32
  }
  func.func @transform_5(%arg0: i32) -> (i32, i32) {
    %c0_i32 = arith.constant 0 : i32
    %c0_i32_0 = arith.constant 0 : i32
    %c0_i32_1 = arith.constant 0 : i32
    return %c0_i32, %c0_i32_0 : i32, i32
  }
  func.func @transform_6(%arg0: i32) -> (i32, i32) {
    %c0_i32 = arith.constant 0 : i32
    %c0_i32_0 = arith.constant 0 : i32
    %c0_i32_1 = arith.constant 0 : i32
    return %c0_i32, %c0_i32_0 : i32, i32
  }
  func.func @transform_7(%arg0: i32) -> (i32, i32) {
    %c0_i32 = arith.constant 0 : i32
    %c0_i32_0 = arith.constant 0 : i32
    %c0_i32_1 = arith.constant 0 : i32
    return %c0_i32, %c0_i32_0 : i32, i32
  }
  func.func @transform_8(%arg0: i32) -> (i32, i32) {
    %c0_i32 = arith.constant 0 : i32
    %c0_i32_0 = arith.constant 0 : i32
    %c0_i32_1 = arith.constant 0 : i32
    return %c0_i32, %c0_i32_0 : i32, i32
  }
}

module attributes {stable_mosaic.version = 11 : i64} {
  func.func @_message_kernel(%arg0: i32, %arg1: i32, %arg2: memref<128x1xi32, #tpu.memory_space<vmem>>, %arg3: memref<1x128xi32, #tpu.memory_space<vmem>>, %arg4: memref<128x32xf32, #tpu.memory_space<vmem>>, %arg5: memref<64x64xbf16, #tpu.memory_space<vmem>>, %arg6: memref<32x64xbf16, #tpu.memory_space<vmem>>, %arg7: memref<1x64xf32, #tpu.memory_space<vmem>>, %arg8: memref<64x64xbf16, #tpu.memory_space<vmem>>, %arg9: memref<1x64xf32, #tpu.memory_space<vmem>>, %arg10: memref<64x64xbf16, #tpu.memory_space<vmem>>, %arg11: memref<1x64xf32, #tpu.memory_space<vmem>>, %arg12: memref<32x2xf32, #tpu.memory_space<vmem>>, %arg13: memref<1x2xf32, #tpu.memory_space<vmem>>, %arg14: memref<128x32xf32, #tpu.memory_space<vmem>>, %arg15: memref<128x2xf32, #tpu.memory_space<vmem>>, %arg16: memref<1x64x32xf32, #tpu.memory_space<vmem>>) attributes {dimension_semantics = [#tpu.dimension_semantics<parallel>, #tpu.dimension_semantics<arbitrary>], iteration_bounds = array<i64: 2, 1>, scalar_prefetch = 0 : i64, scratch_operands = 0 : i64, tpu.core_type = #tpu.core_type<tc>, window_params = [{transform_indices = @transform_0, window_bounds = array<i64: 128, 1>}, {transform_indices = @transform_1, window_bounds = array<i64: 1, 128>}, {transform_indices = @transform_2, window_bounds = array<i64: 128, 32>}, {pipeline_mode = #tpu.pipeline_mode<synchronous>, transform_indices = @transform_3, window_bounds = array<i64: 64, 64>}, {pipeline_mode = #tpu.pipeline_mode<synchronous>, transform_indices = @transform_4, window_bounds = array<i64: 32, 64>}, {pipeline_mode = #tpu.pipeline_mode<synchronous>, transform_indices = @transform_5, window_bounds = array<i64: 1, 64>}, {pipeline_mode = #tpu.pipeline_mode<synchronous>, transform_indices = @transform_6, window_bounds = array<i64: 64, 64>}, {pipeline_mode = #tpu.pipeline_mode<synchronous>, transform_indices = @transform_7, window_bounds = array<i64: 1, 64>}, {pipeline_mode = #tpu.pipeline_mode<synchronous>, transform_indices = @transform_8, window_bounds = array<i64: 64, 64>}, {pipeline_mode = #tpu.pipeline_mode<synchronous>, transform_indices = @transform_9, window_bounds = array<i64: 1, 64>}, {pipeline_mode = #tpu.pipeline_mode<synchronous>, transform_indices = @transform_10, window_bounds = array<i64: 32, 2>}, {pipeline_mode = #tpu.pipeline_mode<synchronous>, transform_indices = @transform_11, window_bounds = array<i64: 1, 2>}, {transform_indices = @transform_12, window_bounds = array<i64: 128, 32>}, {transform_indices = @transform_13, window_bounds = array<i64: 128, 2>}, {transform_indices = @transform_14, window_bounds = array<i64: 1, 64, 32>}]} {
    %c0_i32 = arith.constant 0 : i32
    %0 = arith.cmpi eq, %arg1, %c0_i32 : i32
    %1 = arith.extui %0 : i1 to i32
    %c0_i32_0 = arith.constant 0 : i32
    %2 = arith.cmpi ne, %1, %c0_i32_0 : i32
    scf.if %2 {
      %cst_45 = arith.constant 0.000000e+00 : f32
      %75 = vector.broadcast %cst_45 : f32 to vector<1x64x32xf32>
      %c0_46 = arith.constant 0 : index
      %c0_47 = arith.constant 0 : index
      %c0_48 = arith.constant 0 : index
      %76 = vector.load %arg16[%c0_46, %c0_47, %c0_48] : memref<1x64x32xf32, #tpu.memory_space<vmem>>, vector<1x64x32xf32>
      tpu.vector_store %arg16[%c0_46, %c0_47, %c0_48], %75 {strides = array<i32>} : memref<1x64x32xf32, #tpu.memory_space<vmem>>, vector<1x64x32xf32>,
    } else {
    }
    %c0 = arith.constant 0 : index
    %c0_1 = arith.constant 0 : index
    %3 = vector.load %arg4[%c0, %c0_1] : memref<128x32xf32, #tpu.memory_space<vmem>>, vector<128x32xf32>
    %4 = arith.truncf %3 : vector<128x32xf32> to vector<128x32xbf16>
    %c0_2 = arith.constant 0 : index
    %c0_3 = arith.constant 0 : index
    %5 = vector.load %arg6[%c0_2, %c0_3] : memref<32x64xbf16, #tpu.memory_space<vmem>>, vector<32x64xbf16>
    %cst = arith.constant dense<0.000000e+00> : vector<128x64xf32>
    %6 = tpu.matmul %4, %5, %cst {dimension_numbers = #tpu.dot_dimension_numbers<[1], [0], [0], [1], [0, 0, 1, 1], [], []>} : vector<128x32xbf16>, vector<32x64xbf16>, vector<128x64xf32> -> vector<128x64xf32>
    %c0_4 = arith.constant 0 : index
    %c0_5 = arith.constant 0 : index
    %7 = vector.load %arg7[%c0_4, %c0_5] : memref<1x64xf32, #tpu.memory_space<vmem>>, vector<1x64xf32>
    %8 = vector.broadcast %7 : vector<1x64xf32> to vector<128x64xf32>
    %9 = arith.addf %6, %8 : vector<128x64xf32>
    %10 = tpu.iota {dimensions = array<i32: 1>} : vector<128x64xi32>
    %c0_6 = arith.constant 0 : index
    %c0_7 = arith.constant 0 : index
    %11 = vector.load %arg2[%c0_6, %c0_7] : memref<128x1xi32, #tpu.memory_space<vmem>>, vector<128x1xi32>
    %12 = vector.broadcast %11 : vector<128x1xi32> to vector<128x64xi32>
    %13 = arith.cmpi eq, %10, %12 : vector<128x64xi32>
    %14 = arith.extui %13 : vector<128x64xi1> to vector<128x64xi32>
    %15 = arith.sitofp %14 : vector<128x64xi32> to vector<128x64xf32>
    %16 = arith.truncf %15 : vector<128x64xf32> to vector<128x64xbf16>
    %c0_8 = arith.constant 0 : index
    %c0_9 = arith.constant 0 : index
    %17 = vector.load %arg5[%c0_8, %c0_9] : memref<64x64xbf16, #tpu.memory_space<vmem>>, vector<64x64xbf16>
    %cst_10 = arith.constant dense<0.000000e+00> : vector<128x64xf32>
    %18 = tpu.matmul %16, %17, %cst_10 {dimension_numbers = #tpu.dot_dimension_numbers<[1], [0], [0], [1], [0, 0, 1, 1], [], []>} : vector<128x64xbf16>, vector<64x64xbf16>, vector<128x64xf32> -> vector<128x64xf32>
    %19 = arith.subf %18, %9 : vector<128x64xf32>
    %20 = arith.truncf %19 : vector<128x64xf32> to vector<128x64xbf16>
    %c0_11 = arith.constant 0 : index
    %c0_12 = arith.constant 0 : index
    %21 = vector.load %arg8[%c0_11, %c0_12] : memref<64x64xbf16, #tpu.memory_space<vmem>>, vector<64x64xbf16>
    %cst_13 = arith.constant dense<0.000000e+00> : vector<128x64xf32>
    %22 = tpu.matmul %20, %21, %cst_13 {dimension_numbers = #tpu.dot_dimension_numbers<[1], [0], [0], [1], [0, 0, 1, 1], [], []>} : vector<128x64xbf16>, vector<64x64xbf16>, vector<128x64xf32> -> vector<128x64xf32>
    %c0_14 = arith.constant 0 : index
    %c0_15 = arith.constant 0 : index
    %23 = vector.load %arg9[%c0_14, %c0_15] : memref<1x64xf32, #tpu.memory_space<vmem>>, vector<1x64xf32>
    %24 = vector.broadcast %23 : vector<1x64xf32> to vector<128x64xf32>
    %25 = arith.addf %22, %24 : vector<128x64xf32>
    %cst_16 = arith.constant 0.000000e+00 : f32
    %26 = vector.broadcast %cst_16 : f32 to vector<128x64xf32>
    %27 = arith.cmpf ogt, %25, %26 : vector<128x64xf32>
    %cst_17 = arith.constant 0.00999999977 : f32
    %28 = vector.broadcast %cst_17 : f32 to vector<128x64xf32>
    %29 = arith.mulf %28, %25 : vector<128x64xf32>
    %30 = arith.select %27, %25, %29 : vector<128x64xi1>, vector<128x64xf32>
    %31 = arith.truncf %30 : vector<128x64xf32> to vector<128x64xbf16>
    %c0_18 = arith.constant 0 : index
    %c0_19 = arith.constant 0 : index
    %32 = vector.load %arg10[%c0_18, %c0_19] : memref<64x64xbf16, #tpu.memory_space<vmem>>, vector<64x64xbf16>
    %cst_20 = arith.constant dense<0.000000e+00> : vector<128x64xf32>
    %33 = tpu.matmul %31, %32, %cst_20 {dimension_numbers = #tpu.dot_dimension_numbers<[1], [0], [0], [1], [0, 0, 1, 1], [], []>} : vector<128x64xbf16>, vector<64x64xbf16>, vector<128x64xf32> -> vector<128x64xf32>
    %c0_21 = arith.constant 0 : index
    %c0_22 = arith.constant 0 : index
    %34 = vector.load %arg11[%c0_21, %c0_22] : memref<1x64xf32, #tpu.memory_space<vmem>>, vector<1x64xf32>
    %35 = vector.broadcast %34 : vector<1x64xf32> to vector<128x64xf32>
    %36 = arith.addf %33, %35 : vector<128x64xf32>
    %cst_23 = arith.constant 0.000000e+00 : f32
    %37 = vector.broadcast %cst_23 : f32 to vector<128x64xf32>
    %38 = arith.cmpf ogt, %36, %37 : vector<128x64xf32>
    %cst_24 = arith.constant 0.00999999977 : f32
    %39 = vector.broadcast %cst_24 : f32 to vector<128x64xf32>
    %40 = arith.mulf %39, %36 : vector<128x64xf32>
    %41 = arith.select %38, %36, %40 : vector<128x64xi1>, vector<128x64xf32>
    %42 = vector.extract_strided_slice %41 {offsets = [0, 0], sizes = [128, 32], strides = [1, 1]} : vector<128x64xf32> to vector<128x32xf32>
    %43 = vector.extract_strided_slice %41 {offsets = [0, 32], sizes = [128, 32], strides = [1, 1]} : vector<128x64xf32> to vector<128x32xf32>
    %44 = arith.addf %42, %43 : vector<128x32xf32>
    %c0_25 = arith.constant 0 : index
    %c0_26 = arith.constant 0 : index
    %45 = vector.load %arg14[%c0_25, %c0_26] : memref<128x32xf32, #tpu.memory_space<vmem>>, vector<128x32xf32>
    tpu.vector_store %arg14[%c0_25, %c0_26], %44 {strides = array<i32>} : memref<128x32xf32, #tpu.memory_space<vmem>>, vector<128x32xf32>,
    %c0_27 = arith.constant 0 : index
    %c0_28 = arith.constant 0 : index
    %46 = vector.load %arg12[%c0_27, %c0_28] : memref<32x2xf32, #tpu.memory_space<vmem>>, vector<32x2xf32>
    %cst_29 = arith.constant dense<0.000000e+00> : vector<128x2xf32>
    %47 = tpu.matmul %44, %46, %cst_29 {dimension_numbers = #tpu.dot_dimension_numbers<[1], [0], [0], [1], [0, 0, 1, 1], [], []>} : vector<128x32xf32>, vector<32x2xf32>, vector<128x2xf32> -> vector<128x2xf32>
    %c0_30 = arith.constant 0 : index
    %c0_31 = arith.constant 0 : index
    %48 = vector.load %arg13[%c0_30, %c0_31] : memref<1x2xf32, #tpu.memory_space<vmem>>, vector<1x2xf32>
    %49 = vector.broadcast %48 : vector<1x2xf32> to vector<128x2xf32>
    %50 = arith.addf %47, %49 : vector<128x2xf32>
    %51 = vector.extract_strided_slice %50 {offsets = [0, 0], sizes = [128, 1], strides = [1, 1]} : vector<128x2xf32> to vector<128x1xf32>
    %52 = vector.extract_strided_slice %50 {offsets = [0, 1], sizes = [128, 1], strides = [1, 1]} : vector<128x2xf32> to vector<128x1xf32>
    %53 = arith.subf %51, %52 : vector<128x1xf32>
    %cst_32 = arith.constant 0.000000e+00 : f32
    %54 = vector.broadcast %cst_32 : f32 to vector<128x1xf32>
    %55 = arith.subf %54, %53 : vector<128x1xf32>
    %56 = tpu.concatenate %55, %53 in 1 : vector<128x1xf32>, vector<128x1xf32> -> vector<128x2xf32>
    %57 = math.exp %56 : vector<128x2xf32>
    %cst_33 = arith.constant 1.000000e+00 : f32
    %58 = vector.broadcast %cst_33 : f32 to vector<128x2xf32>
    %59 = arith.addf %58, %57 : vector<128x2xf32>
    %60 = tpu.reciprocal %59 {approx = true} : vector<128x2xf32> -> vector<128x2xf32>
    %c0_34 = arith.constant 0 : index
    %c0_35 = arith.constant 0 : index
    %61 = vector.load %arg15[%c0_34, %c0_35] : memref<128x2xf32, #tpu.memory_space<vmem>>, vector<128x2xf32>
    tpu.vector_store %arg15[%c0_34, %c0_35], %60 {strides = array<i32>} : memref<128x2xf32, #tpu.memory_space<vmem>>, vector<128x2xf32>,
    %62 = tpu.iota {dimensions = array<i32: 0>} : vector<64x128xi32>
    %c0_36 = arith.constant 0 : index
    %c0_37 = arith.constant 0 : index
    %63 = vector.load %arg3[%c0_36, %c0_37] : memref<1x128xi32, #tpu.memory_space<vmem>>, vector<1x128xi32>
    %64 = vector.broadcast %63 : vector<1x128xi32> to vector<64x128xi32>
    %65 = arith.cmpi eq, %62, %64 : vector<64x128xi32>
    %66 = arith.extui %65 : vector<64x128xi1> to vector<64x128xi32>
    %67 = arith.sitofp %66 : vector<64x128xi32> to vector<64x128xf32>
    %68 = arith.truncf %67 : vector<64x128xf32> to vector<64x128xbf16>
    %c0_38 = arith.constant 0 : index
    %c0_39 = arith.constant 0 : index
    %c0_40 = arith.constant 0 : index
    %69 = vector.load %arg16[%c0_38, %c0_39, %c0_40] : memref<1x64x32xf32, #tpu.memory_space<vmem>>, vector<1x64x32xf32>
    %70 = arith.truncf %44 : vector<128x32xf32> to vector<128x32xbf16>
    %cst_41 = arith.constant dense<0.000000e+00> : vector<64x32xf32>
    %71 = tpu.matmul %68, %70, %cst_41 {dimension_numbers = #tpu.dot_dimension_numbers<[1], [0], [0], [1], [0, 0, 1, 1], [], []>} : vector<64x128xbf16>, vector<128x32xbf16>, vector<64x32xf32> -> vector<64x32xf32>
    %72 = vector.shape_cast %71 : vector<64x32xf32> to vector<1x64x32xf32>
    %73 = arith.addf %69, %72 : vector<1x64x32xf32>
    %c0_42 = arith.constant 0 : index
    %c0_43 = arith.constant 0 : index
    %c0_44 = arith.constant 0 : index
    %74 = vector.load %arg16[%c0_42, %c0_43, %c0_44] : memref<1x64x32xf32, #tpu.memory_space<vmem>>, vector<1x64x32xf32>
    tpu.vector_store %arg16[%c0_42, %c0_43, %c0_44], %73 {strides = array<i32>} : memref<1x64x32xf32, #tpu.memory_space<vmem>>, vector<1x64x32xf32>,
    return
  }
  func.func @transform_0(%arg0: i32, %arg1: i32) -> (i32, i32) {
    %c1_i32 = arith.constant 1 : i32
    %0 = arith.muli %arg0, %c1_i32 : i32
    %1 = arith.addi %0, %arg1 : i32
    %c0_i32 = arith.constant 0 : i32
    %c0_i32_0 = arith.constant 0 : i32
    return %1, %c0_i32 : i32, i32
  }
  func.func @transform_1(%arg0: i32, %arg1: i32) -> (i32, i32) {
    %c1_i32 = arith.constant 1 : i32
    %0 = arith.muli %arg0, %c1_i32 : i32
    %1 = arith.addi %0, %arg1 : i32
    %c0_i32 = arith.constant 0 : i32
    %c0_i32_0 = arith.constant 0 : i32
    return %c0_i32, %1 : i32, i32
  }
  func.func @transform_2(%arg0: i32, %arg1: i32) -> (i32, i32) {
    %c1_i32 = arith.constant 1 : i32
    %0 = arith.muli %arg0, %c1_i32 : i32
    %1 = arith.addi %0, %arg1 : i32
    %c0_i32 = arith.constant 0 : i32
    %c0_i32_0 = arith.constant 0 : i32
    return %1, %c0_i32 : i32, i32
  }
  func.func @transform_3(%arg0: i32, %arg1: i32) -> (i32, i32) {
    %c0_i32 = arith.constant 0 : i32
    %c0_i32_0 = arith.constant 0 : i32
    %c0_i32_1 = arith.constant 0 : i32
    return %c0_i32, %c0_i32_0 : i32, i32
  }
  func.func @transform_4(%arg0: i32, %arg1: i32) -> (i32, i32) {
    %c0_i32 = arith.constant 0 : i32
    %c0_i32_0 = arith.constant 0 : i32
    %c0_i32_1 = arith.constant 0 : i32
    return %c0_i32, %c0_i32_0 : i32, i32
  }
  func.func @transform_5(%arg0: i32, %arg1: i32) -> (i32, i32) {
    %c0_i32 = arith.constant 0 : i32
    %c0_i32_0 = arith.constant 0 : i32
    %c0_i32_1 = arith.constant 0 : i32
    return %c0_i32, %c0_i32_0 : i32, i32
  }
  func.func @transform_6(%arg0: i32, %arg1: i32) -> (i32, i32) {
    %c0_i32 = arith.constant 0 : i32
    %c0_i32_0 = arith.constant 0 : i32
    %c0_i32_1 = arith.constant 0 : i32
    return %c0_i32, %c0_i32_0 : i32, i32
  }
  func.func @transform_7(%arg0: i32, %arg1: i32) -> (i32, i32) {
    %c0_i32 = arith.constant 0 : i32
    %c0_i32_0 = arith.constant 0 : i32
    %c0_i32_1 = arith.constant 0 : i32
    return %c0_i32, %c0_i32_0 : i32, i32
  }
  func.func @transform_8(%arg0: i32, %arg1: i32) -> (i32, i32) {
    %c0_i32 = arith.constant 0 : i32
    %c0_i32_0 = arith.constant 0 : i32
    %c0_i32_1 = arith.constant 0 : i32
    return %c0_i32, %c0_i32_0 : i32, i32
  }
  func.func @transform_9(%arg0: i32, %arg1: i32) -> (i32, i32) {
    %c0_i32 = arith.constant 0 : i32
    %c0_i32_0 = arith.constant 0 : i32
    %c0_i32_1 = arith.constant 0 : i32
    return %c0_i32, %c0_i32_0 : i32, i32
  }
  func.func @transform_10(%arg0: i32, %arg1: i32) -> (i32, i32) {
    %c0_i32 = arith.constant 0 : i32
    %c0_i32_0 = arith.constant 0 : i32
    %c0_i32_1 = arith.constant 0 : i32
    return %c0_i32, %c0_i32_0 : i32, i32
  }
  func.func @transform_11(%arg0: i32, %arg1: i32) -> (i32, i32) {
    %c0_i32 = arith.constant 0 : i32
    %c0_i32_0 = arith.constant 0 : i32
    %c0_i32_1 = arith.constant 0 : i32
    return %c0_i32, %c0_i32_0 : i32, i32
  }
  func.func @transform_12(%arg0: i32, %arg1: i32) -> (i32, i32) {
    %c1_i32 = arith.constant 1 : i32
    %0 = arith.muli %arg0, %c1_i32 : i32
    %1 = arith.addi %0, %arg1 : i32
    %c0_i32 = arith.constant 0 : i32
    %c0_i32_0 = arith.constant 0 : i32
    return %1, %c0_i32 : i32, i32
  }
  func.func @transform_13(%arg0: i32, %arg1: i32) -> (i32, i32) {
    %c1_i32 = arith.constant 1 : i32
    %0 = arith.muli %arg0, %c1_i32 : i32
    %1 = arith.addi %0, %arg1 : i32
    %c0_i32 = arith.constant 0 : i32
    %c0_i32_0 = arith.constant 0 : i32
    return %1, %c0_i32 : i32, i32
  }
  func.func @transform_14(%arg0: i32, %arg1: i32) -> (i32, i32, i32) {
    %c0_i32 = arith.constant 0 : i32
    %c0_i32_0 = arith.constant 0 : i32
    %c0_i32_1 = arith.constant 0 : i32
    return %arg0, %c0_i32, %c0_i32_0 : i32, i32, i32
  }
}

module attributes {stable_mosaic.version = 11 : i64} {
  func.func @_update_beliefs_kernel(%arg0: memref<64x32xf32, #tpu.memory_space<vmem>>, %arg1: memref<2x64x32xf32, #tpu.memory_space<vmem>>, %arg2: memref<64x32xf32, #tpu.memory_space<vmem>>, %arg3: memref<1x32xf32, #tpu.memory_space<vmem>>, %arg4: memref<32x2xf32, #tpu.memory_space<vmem>>, %arg5: memref<1x2xf32, #tpu.memory_space<vmem>>, %arg6: memref<64x2xf32, #tpu.memory_space<vmem>>) attributes {dimension_semantics = [], scalar_prefetch = 0 : i64, scratch_operands = 0 : i64, tpu.core_type = #tpu.core_type<tc>} {
    %c0 = arith.constant 0 : index
    %c0_0 = arith.constant 0 : index
    %c0_1 = arith.constant 0 : index
    %0 = vector.load %arg1[%c0, %c0_0, %c0_1] : memref<2x64x32xf32, #tpu.memory_space<vmem>>, vector<2x64x32xf32>
    %cst = arith.constant dense<0.000000e+00> : vector<64x32xf32>
    %1 = vector.multi_reduction <add>, %0, %cst [0] : vector<2x64x32xf32> to vector<64x32xf32>
    %c0_2 = arith.constant 0 : index
    %c0_3 = arith.constant 0 : index
    %2 = vector.load %arg0[%c0_2, %c0_3] : memref<64x32xf32, #tpu.memory_space<vmem>>, vector<64x32xf32>
    %3 = tpu.concatenate %2, %1 in 1 : vector<64x32xf32>, vector<64x32xf32> -> vector<64x64xf32>
    %c0_4 = arith.constant 0 : index
    %c0_5 = arith.constant 0 : index
    %4 = vector.load %arg2[%c0_4, %c0_5] : memref<64x32xf32, #tpu.memory_space<vmem>>, vector<64x32xf32>
    %cst_6 = arith.constant dense<0.000000e+00> : vector<64x32xf32>
    %5 = tpu.matmul %3, %4, %cst_6 {dimension_numbers = #tpu.dot_dimension_numbers<[1], [0], [0], [1], [0, 0, 1, 1], [], []>} : vector<64x64xf32>, vector<64x32xf32>, vector<64x32xf32> -> vector<64x32xf32>
    %c0_7 = arith.constant 0 : index
    %c0_8 = arith.constant 0 : index
    %6 = vector.load %arg3[%c0_7, %c0_8] : memref<1x32xf32, #tpu.memory_space<vmem>>, vector<1x32xf32>
    %7 = vector.broadcast %6 : vector<1x32xf32> to vector<64x32xf32>
    %8 = arith.addf %5, %7 : vector<64x32xf32>
    %cst_9 = arith.constant 0.000000e+00 : f32
    %9 = vector.broadcast %cst_9 : f32 to vector<64x32xf32>
    %10 = arith.cmpf ogt, %8, %9 : vector<64x32xf32>
    %cst_10 = arith.constant 0.00999999977 : f32
    %11 = vector.broadcast %cst_10 : f32 to vector<64x32xf32>
    %12 = arith.mulf %11, %8 : vector<64x32xf32>
    %13 = arith.select %10, %8, %12 : vector<64x32xi1>, vector<64x32xf32>
    %c0_11 = arith.constant 0 : index
    %c0_12 = arith.constant 0 : index
    %14 = vector.load %arg4[%c0_11, %c0_12] : memref<32x2xf32, #tpu.memory_space<vmem>>, vector<32x2xf32>
    %cst_13 = arith.constant dense<0.000000e+00> : vector<64x2xf32>
    %15 = tpu.matmul %13, %14, %cst_13 {dimension_numbers = #tpu.dot_dimension_numbers<[1], [0], [0], [1], [0, 0, 1, 1], [], []>} : vector<64x32xf32>, vector<32x2xf32>, vector<64x2xf32> -> vector<64x2xf32>
    %c0_14 = arith.constant 0 : index
    %c0_15 = arith.constant 0 : index
    %16 = vector.load %arg5[%c0_14, %c0_15] : memref<1x2xf32, #tpu.memory_space<vmem>>, vector<1x2xf32>
    %17 = vector.broadcast %16 : vector<1x2xf32> to vector<64x2xf32>
    %18 = arith.addf %15, %17 : vector<64x2xf32>
    %19 = vector.extract_strided_slice %18 {offsets = [0, 0], sizes = [64, 1], strides = [1, 1]} : vector<64x2xf32> to vector<64x1xf32>
    %20 = vector.extract_strided_slice %18 {offsets = [0, 1], sizes = [64, 1], strides = [1, 1]} : vector<64x2xf32> to vector<64x1xf32>
    %21 = arith.subf %19, %20 : vector<64x1xf32>
    %cst_16 = arith.constant 0.000000e+00 : f32
    %22 = vector.broadcast %cst_16 : f32 to vector<64x1xf32>
    %23 = arith.subf %22, %21 : vector<64x1xf32>
    %24 = tpu.concatenate %23, %21 in 1 : vector<64x1xf32>, vector<64x1xf32> -> vector<64x2xf32>
    %25 = math.exp %24 : vector<64x2xf32>
    %cst_17 = arith.constant 1.000000e+00 : f32
    %26 = vector.broadcast %cst_17 : f32 to vector<64x2xf32>
    %27 = arith.addf %26, %25 : vector<64x2xf32>
    %28 = tpu.reciprocal %27 {approx = true} : vector<64x2xf32> -> vector<64x2xf32>
    %c0_18 = arith.constant 0 : index
    %c0_19 = arith.constant 0 : index
    %29 = vector.load %arg6[%c0_18, %c0_19] : memref<64x2xf32, #tpu.memory_space<vmem>>, vector<64x2xf32>
    tpu.vector_store %arg6[%c0_18, %c0_19], %28 {strides = array<i32>} : memref<64x2xf32, #tpu.memory_space<vmem>>, vector<64x2xf32>,
    return
  }
}

</mosaic_0001>

<bundles_post_ra>
// kernel: mpnn_s2v_loop_forward.3
= control target key start
LH: loop header
LB: loop body
LE: loop exit
PB: predicated region body
PF: predicated region fallthrough
CT: control target
= control target key end

     0   :  { %s1033_s27 = smov 0   ;;  %s1273_s0 = inlined_call_operand.vmem [shape: s32[1,256], index: 0, kind: input, shape index: {}]   ;;  %s1274_s1 = inlined_call_operand.vmem [shape: f32[64,3], index: 1, kind: input, shape index: {}]   ;;  %s1275_s2 = inlined_call_operand.vmem [shape: f32[256,32], index: 2, kind: input, shape index: {}]   ;;  %s1276_s3 = inlined_call_operand.vmem [shape: f32[3,32], index: 3, kind: input, shape index: {}]   ;;  %s1277_s4 = inlined_call_operand.vmem [shape: f32[1,32], index: 4, kind: input, shape index: {}]   ;;  %s1278_s5 = inlined_call_operand.vmem [shape: bf16[32,32], index: 5, kind: input, shape index: {}]   ;;  %s1279_s6 = inlined_call_operand.vmem [shape: f32[1,32], index: 6, kind: input, shape index: {}]   ;;  %s1280_s7 = inlined_call_operand.vmem [shape: f32[64,32], index: 7, kind: output, shape index: {0}]   ;;  %s1281_s8 = inlined_call_operand.vmem [shape: f32[64,32], index: 8, kind: output, shape index: {1}]  }
   0x1 LB: > { %s828_s28 = sadd.s32 4294967295, %s984_s27   ;;  %p831_p0 = scmp.ge.s32.totalorder %s984_s27, 1  ;;  %s984_s27 = sphi %s1033_s27, %s19_s27  }
   0x2   : > { %p264_p1 = scmp.lt.s32.totalorder %s984_s27, 3 }
   0x4   : > { %p265_p2 = pnand %p831_p0, %p264_p1 }
   0x5   : > { %p296_p3 = scmp.lt.s32.totalorder (!%p265_p2), %s828_s28, 1  ;;  %s832_s29 = sshll.u32 (!%p265_p2), %s828_s28, 4 }
   0x6   : > { %268 = sbr.rel (%p265_p2) target bundleno = 725 (0x2d5), region = 48  ;;  %p300_p4 = scmp.lt.s32.totalorder (!%p265_p2), %s832_s29, 31 }
   0x7   : > { %p834_p5 = scmp.ne.s32.totalorder (!%p265_p2), %s828_s28, 0 }
   0xd   : > { %s1041_s30 = scalar_select %p296_p3, %s828_s28, 1 }
   0xe   : > { %s1289_s29 = smov (!%p300_p4, %s832_s29), 31  ;;  %309 = sbr.rel (%p834_p5) target bundleno = 239 (0xef), region = 52 }
   0xf   : > { %s298_s11 = scalar_lea.vmem %s1273_s0, %s1041_s30  ;;  %s833_s12 = sshll.u32 %s1289_s29, 3  ;;  %v318_v0 = vld [vmem:[%s1276_s3] sm:$0x7] (!%p834_p5)  ;;  %vm351_vm0 = vcmask (!%p834_p5), 1042432   ;;  %vm326_vm1 = vcmask (!%p834_p5), 23552   ;;  %v311_v3 = vld [vmem:[%s1274_s1 + $0x8] sm:$0xff] (!%p834_p5) }
  0x10   : > { %s1050_s15 = scalar_lea.vmem %s1275_s2, %s833_s12  ;;  %v310_v1 = vld [vmem:[%s1274_s1] sm:$0xff] (!%p834_p5)  ;;  %906 = vmatprep.subr.msk.mxu0 (!%p834_p5), %vm351_vm0, %v318_v0  ;;  %964 = vmatprep.subr.msk.mxu1 (!%p834_p5), %vm351_vm0, %v318_v0  ;;  %v315_v4 = vld [vmem:[%s1274_s1 + $0x28] sm:$0xff] (!%p834_p5)  ;;  %v312_v5 = vld [vmem:[%s1274_s1 + $0x10] sm:$0xff] (!%p834_p5)  ;;  %vm460_vm2 = vcmask (!%p834_p5), 261120   ;;  %v986_v9 = vmov (!%p834_p5), 0.0  }
  0x11   : > { %v314_v2 = vld [vmem:[%s1274_s1 + $0x20] sm:$0xff] (!%p834_p5)  ;;  %907 = vmatpush3.msk.msra.mxu0 (!%p834_p5), %vm351_vm0, %v318_v0  ;;  %965 = vmatpush3.msk.msra.mxu1 (!%p834_p5), %vm351_vm0, %v318_v0  ;;  %v316_v6 = vld [vmem:[%s1274_s1 + $0x30] sm:$0xff] (!%p834_p5)  ;;  %v313_v7 = vld [vmem:[%s1274_s1 + $0x18] sm:$0xff] (!%p834_p5)  ;;  %469 = vst.msk [vmem:[%s1281_s8] sm:$0xff] (!%p834_p5), %vm460_vm2, %v986_v9 }
  0x12   : > { %908 = vmatprep.mubr.msk.f32.mxu0 (!%p834_p5), %vm326_vm1, %v310_v1  ;;  %914 = vmatprep.mubr.msk.f32.mxu1 (!%p834_p5), %vm326_vm1, %v314_v2  ;;  %v317_v8 = vld [vmem:[%s1274_s1 + $0x38] sm:$0xff] (!%p834_p5)  ;;  %470 = vst.msk [vmem:[%s1281_s8 + $0x8] sm:$0xff] (!%p834_p5), %vm460_vm2, %v986_v9  ;;  %471 = vst.msk [vmem:[%s1281_s8 + $0x10] sm:$0xff] (!%p834_p5), %vm460_vm2, %v986_v9  ;;  %v835_v10 = vld [vmem:[%s1277_s4] ss:$0 sm:$0xff] (!%p834_p5) }
  0x13   : > { %909 = vmatmul.mubr.msk.f32.vlgmr.msra.gmra.mrb[0].mxu0 (!%p834_p5), %vm326_vm1, %v311_v3  ;;  %915 = vmatmul.mubr.msk.f32.vlgmr.msra.gmra.mrb[0].mxu1 (!%p834_p5), %vm326_vm1, %v315_v4  ;;  %472 = vst.msk [vmem:[%s1281_s8 + $0x18] sm:$0xff] (!%p834_p5), %vm460_vm2, %v986_v9  ;;  %473 = vst.msk [vmem:[%s1281_s8 + $0x20] sm:$0xff] (!%p834_p5), %vm460_vm2, %v986_v9 }
  0x14   : > { %911 = vmatprep.mubr.msk.f32.mxu0 (!%p834_p5), %vm326_vm1, %v312_v5  ;;  %917 = vmatprep.mubr.msk.f32.mxu1 (!%p834_p5), %vm326_vm1, %v316_v6  ;;  %474 = vst.msk [vmem:[%s1281_s8 + $0x28] sm:$0xff] (!%p834_p5), %vm460_vm2, %v986_v9  ;;  %475 = vst.msk [vmem:[%s1281_s8 + $0x30] sm:$0xff] (!%p834_p5), %vm460_vm2, %v986_v9 }
  0x15   : > { %476 = vst.msk [vmem:[%s1281_s8 + $0x38] sm:$0xff] %vm460_vm2, %v986_v9 }
  0x17   : > { %912 = vmatmul.mubr.msk.f32.gmra.mrb[2].mxu0 %vm326_vm1, %v313_v7  ;;  %918 = vmatmul.mubr.msk.f32.gmra.mrb[2].mxu1 %vm326_vm1, %v317_v8 }
  0xe6   : > { %v910_v11 = vpop.f32.mrb[0].mxu0  ;;  %v916_v12 = vpop.f32.mrb[0].mxu1 }
  0xe7   : > { %v427_v13 = vadd.f32 %v910_v11, %v835_v10  ;;  %v447_v14 = vadd.f32 %v916_v12, %v835_v10  ;;  %v421_v15 = vpop.f32.mrb[1].mxu0  ;;  %v441_v16 = vpop.f32.mrb[1].mxu1 }
  0xe8   : > { %v422_v17 = vadd.f32 %v835_v10, %v421_v15  ;;  %v442_v18 = vadd.f32 %v835_v10, %v441_v16 }
  0xe9   : > { %462 = vst.msk [vmem:[%s1280_s7 + $0x8] sm:$0xff] %vm460_vm2, %v427_v13  ;;  %466 = vst.msk [vmem:[%s1280_s7 + $0x28] sm:$0xff] %vm460_vm2, %v447_v14 }
  0xea   : > { %461 = vst.msk [vmem:[%s1280_s7] sm:$0xff] %vm460_vm2, %v422_v17  ;;  %465 = vst.msk [vmem:[%s1280_s7 + $0x20] sm:$0xff] %vm460_vm2, %v442_v18  ;;  %v913_v19 = vpop.f32.mrb[2].mxu0  ;;  %v919_v20 = vpop.f32.mrb[2].mxu1 }
  0xeb   : > { %v437_v21 = vadd.f32 %v913_v19, %v835_v10  ;;  %v457_v22 = vadd.f32 %v919_v20, %v835_v10  ;;  %v431_v23 = vpop.f32.mrb[3].mxu0  ;;  %v451_v24 = vpop.f32.mrb[3].mxu1 }
  0xec   : > { %v432_v25 = vadd.f32 %v835_v10, %v431_v23  ;;  %v452_v26 = vadd.f32 %v835_v10, %v451_v24 }
  0xed   : > { %464 = vst.msk [vmem:[%s1280_s7 + $0x18] sm:$0xff] %vm460_vm2, %v437_v21  ;;  %468 = vst.msk [vmem:[%s1280_s7 + $0x38] sm:$0xff] %vm460_vm2, %v457_v22 }
  0xee   : > { %463 = vst.msk [vmem:[%s1280_s7 + $0x10] sm:$0xff] %vm460_vm2, %v432_v25  ;;  %467 = vst.msk [vmem:[%s1280_s7 + $0x30] sm:$0xff] %vm460_vm2, %v452_v26 }
  0xef PF: > { %v976_v27 = vld [vmem:[%s1278_s5] sm:$0xff]   ;;  %v977_v28 = vld [vmem:[%s1278_s5 + $0x8] sm:$0xff]   ;;  %vm524_vm3 = vcmask 261120   ;;  %v479_v32 = vld [vmem:[%s1050_s15 + $0x10] sm:$0xff]  ;;  %v646_v53 = vlaneseq  ;;  %v987_v59 = vmov 1.0|1.0  }
  0xf0   : > { %920 = vmatprep.subr.bf16.mxu0 %v976_v27  ;;  %v477_v29 = vld [vmem:[%s1050_s15] sm:$0xff]  ;;  %v478_v30 = vld [vmem:[%s1050_s15 + $0x8] sm:$0xff]  ;;  %v480_v33 = vld [vmem:[%s1050_s15 + $0x18] sm:$0xff] }
  0xf1   : > { %921 = vmatpush3.bf16.msra.mxu0 %v976_v27  ;;  %v493_v31 = vpack.c.bf16 %v478_v30, %v477_v29  ;;  %v481_v34 = vld [vmem:[%s1050_s15 + $0x20] sm:$0xff]  ;;  %v482_v35 = vld [vmem:[%s1050_s15 + $0x28] sm:$0xff]  ;;  %v494_v36 = vpack.c.bf16 %v480_v33, %v479_v32  ;;  %v483_v38 = vld [vmem:[%s1050_s15 + $0x30] sm:$0xff]  ;;  %v647_v54 = vshrl.u32 %v646_v53, 7 }
  0xf2   : > { %922 = vmatprep.subr.bf16.mxu0 %v977_v28  ;;  %v495_v37 = vpack.c.bf16 %v482_v35, %v481_v34  ;;  %v484_v39 = vld [vmem:[%s1050_s15 + $0x38] sm:$0xff]  ;;  %v485_v40 = vld [vmem:[%s1050_s15 + $0x40] sm:$0xff]  ;;  %v486_v41 = vld [vmem:[%s1050_s15 + $0x48] sm:$0xff] }
  0xf3   : > { %924 = vmatprep.mubr.msk.bf16.mxu0 %vm524_vm3, %v493_v31  ;;  %v496_v42 = vpack.c.bf16 %v484_v39, %v483_v38  ;;  %v497_v43 = vpack.c.bf16 %v486_v41, %v485_v40  ;;  %v487_v44 = vld [vmem:[%s1050_s15 + $0x50] sm:$0xff]  ;;  %v488_v45 = vld [vmem:[%s1050_s15 + $0x58] sm:$0xff]  ;;  %v489_v46 = vld [vmem:[%s1050_s15 + $0x60] sm:$0xff]  ;;  %v648_v55 = vadd.s32 8, %v647_v54  ;;  %v649_v57 = vadd.s32 16, %v647_v54 }
  0xf4   : > { %v490_v47 = vld [vmem:[%s1050_s15 + $0x68] sm:$0xff]  ;;  %v498_v48 = vpack.c.bf16 %v488_v45, %v487_v44  ;;  %v491_v50 = vld [vmem:[%s1050_s15 + $0x70] sm:$0xff]  ;;  %v492_v51 = vld [vmem:[%s1050_s15 + $0x78] sm:$0xff]  ;;  %v650_v58 = vadd.s32 24, %v647_v54  ;;  %v651_v61 = vadd.s32 32, %v647_v54  ;;  %v652_v62 = vadd.s32 40, %v647_v54 }
  0xf5   : > { %923 = vmatpush3.bf16.msra.mxu0 %v977_v28  ;;  %v499_v49 = vpack.c.bf16 %v490_v47, %v489_v46  ;;  %v500_v52 = vpack.c.bf16 %v492_v51, %v491_v50  ;;  %v856_v56 = vld [vmem:[%s298_s11] ss:$0 sm:$0xff]  ;;  %v653_v63 = vadd.s32 48, %v647_v54  ;;  %v654_v0 = vadd.s32 56, %v647_v54  ;;  %v690_v44 = vld [vmem:[%s1281_s8 + $0x10] sm:$0xff]  ;;  %v691_v47 = vld [vmem:[%s1281_s8 + $0x18] sm:$0xff] }
  0xf6   : > { %vm660_vm4 = vcmp.eq.s32.totalorder %v647_v54, %v856_v56  ;;  %vm661_vm5 = vcmp.eq.s32.totalorder %v648_v55, %v856_v56  ;;  %vm662_vm7 = vcmp.eq.s32.totalorder %v649_v57, %v856_v56  ;;  %vm663_vm8 = vcmp.eq.s32.totalorder %v650_v58, %v856_v56  ;;  %v845_v4 = vld [vmem:[%s1279_s6] ss:$0 sm:$0xff]  ;;  %v689_v50 = vld [vmem:[%s1281_s8 + $0x8] sm:$0xff] }
  0xf7   : > { %vm865_vm6 = vmpackc.low %vm661_vm5, %vm660_vm4  ;;  %vm664_vm10 = vcmp.eq.s32.totalorder %v651_v61, %v856_v56  ;;  %vm665_vm11 = vcmp.eq.s32.totalorder %v652_v62, %v856_v56  ;;  %vm666_vm13 = vcmp.eq.s32.totalorder %v653_v63, %v856_v56  ;;  %vm667_vm14 = vcmp.eq.s32.totalorder %v654_v0, %v856_v56  ;;  %v688_v45 = vld [vmem:[%s1281_s8] sm:$0xff]  ;;  %v694_v56 = vld [vmem:[%s1281_s8 + $0x30] sm:$0xff] }
  0xf8   : > { %925 = vmatmul.mubr.msk.bf16.vlgmr.msra.gmra.mrb[0].mxu0 %vm524_vm3, %v494_v36  ;;  %956 = vmatprep.mubr.msk.bf16.mxu1 %vm865_vm6, %v987_v59  ;;  %vm1190_vm9 = vmpackc.low %vm663_vm8, %vm662_vm7  ;;  %v692_v57 = vld [vmem:[%s1281_s8 + $0x20] sm:$0xff]  ;;  %v693_v62 = vld [vmem:[%s1281_s8 + $0x28] sm:$0xff] }
  0xf9   : > { %928 = vmatprep.mubr.msk.bf16.mxu0 %vm524_vm3, %v495_v37  ;;  %vm1194_vm12 = vmpackc.low %vm665_vm11, %vm664_vm10 }
  0xfa   : > { %vm1198_vm15 = vmpackc.low %vm667_vm14, %vm666_vm13 }
 0x100   : > { %929 = vmatmul.mubr.msk.bf16.gmra.mrb[4].mxu0 %vm524_vm3, %v496_v42 }
 0x101   : > { %932 = vmatprep.mubr.msk.bf16.mxu0 %vm524_vm3, %v497_v43 }
 0x108   : > { %933 = vmatmul.mubr.msk.bf16.gmra.mrb[8].mxu0 %vm524_vm3, %v498_v48 }
 0x109   : > { %936 = vmatprep.mubr.msk.bf16.mxu0 %vm524_vm3, %v499_v49 }
 0x110   : > { %937 = vmatmul.mubr.msk.bf16.gmra.mrb[12].mxu0 %vm524_vm3, %v500_v52 }
 0x1cb   : > { %v926_v3 = vpop.f32.mrb[0].mxu0 }
 0x1cc   : > { %v583_v5 = vpop.f32.mrb[1].mxu0  ;;  %v592_v7 = vadd.f32 %v926_v3, %v845_v4 }
 0x1cd   : > { %v927_v6 = vpop.f32.mrb[2].mxu0  ;;  %v584_v10 = vadd.f32 %v845_v4, %v583_v5 }
 0x1ce   : > { %v595_v8 = vadd.f32 %v927_v6, %v845_v4  ;;  %v586_v9 = vpop.f32.mrb[3].mxu0 }
 0x1cf   : > { %v587_v11 = vadd.f32 %v845_v4, %v586_v9 }
 0x1d0   : > { %v697_v12 = vpack.c.bf16 %v595_v8, %v592_v7 }
 0x1d1   : > { %v696_v13 = vpack.c.bf16 %v587_v11, %v584_v10 }
 0x1d3   : > { %v930_v14 = vpop.f32.mrb[4].mxu0  ;;  %940 = vmatprep.subr.bf16.mxu1 %v696_v13 }
 0x1d4   : > { %v599_v15 = vpop.f32.mrb[5].mxu0  ;;  %941 = vmatpush3.bf16.msra.mxu1 %v696_v13  ;;  %v608_v17 = vadd.f32 %v930_v14, %v845_v4 }
 0x1d5   : > { %v931_v16 = vpop.f32.mrb[6].mxu0  ;;  %942 = vmatprep.subr.bf16.mxu1 %v697_v12  ;;  %v600_v20 = vadd.f32 %v845_v4, %v599_v15 }
 0x1d6   : > { %v611_v18 = vadd.f32 %v931_v16, %v845_v4  ;;  %v602_v19 = vpop.f32.mrb[7].mxu0 }
 0x1d7   : > { %v603_v21 = vadd.f32 %v845_v4, %v602_v19 }
 0x1d8   : > { %v699_v22 = vpack.c.bf16 %v611_v18, %v608_v17  ;;  %943 = vmatpush3.bf16.msra.mxu1 %v697_v12 }
 0x1d9   : > { %v698_v23 = vpack.c.bf16 %v603_v21, %v600_v20 }
 0x1db   : > { %v934_v24 = vpop.f32.mrb[8].mxu0  ;;  %944 = vmatprep.subr.bf16.mxu1 %v698_v23 }
 0x1dc   : > { %v615_v25 = vpop.f32.mrb[9].mxu0  ;;  %945 = vmatpush3.bf16.msra.mxu1 %v698_v23  ;;  %v624_v27 = vadd.f32 %v934_v24, %v845_v4 }
 0x1dd   : > { %v935_v26 = vpop.f32.mrb[10].mxu0  ;;  %946 = vmatprep.subr.bf16.mxu1 %v699_v22  ;;  %v616_v30 = vadd.f32 %v845_v4, %v615_v25 }
 0x1de   : > { %v627_v28 = vadd.f32 %v935_v26, %v845_v4  ;;  %v618_v29 = vpop.f32.mrb[11].mxu0 }
 0x1df   : > { %v619_v31 = vadd.f32 %v845_v4, %v618_v29 }
 0x1e0   : > { %v701_v32 = vpack.c.bf16 %v627_v28, %v624_v27  ;;  %947 = vmatpush3.bf16.msra.mxu1 %v699_v22 }
 0x1e1   : > { %v700_v33 = vpack.c.bf16 %v619_v31, %v616_v30 }
 0x1e3   : > { %v938_v34 = vpop.f32.mrb[12].mxu0  ;;  %948 = vmatprep.subr.bf16.mxu1 %v700_v33 }
 0x1e4   : > { %v631_v35 = vpop.f32.mrb[13].mxu0  ;;  %949 = vmatpush3.bf16.msra.mxu1 %v700_v33  ;;  %v640_v37 = vadd.f32 %v938_v34, %v845_v4 }
 0x1e5   : > { %v939_v36 = vpop.f32.mrb[14].mxu0  ;;  %950 = vmatprep.subr.bf16.mxu1 %v701_v32  ;;  %v632_v40 = vadd.f32 %v845_v4, %v631_v35 }
 0x1e6   : > { %v643_v38 = vadd.f32 %v939_v36, %v845_v4  ;;  %v634_v39 = vpop.f32.mrb[15].mxu0 }
 0x1e7   : > { %v635_v41 = vadd.f32 %v845_v4, %v634_v39 }
 0x1e8   : > { %v703_v42 = vpack.c.bf16 %v643_v38, %v640_v37  ;;  %951 = vmatpush3.bf16.msra.mxu1 %v701_v32 }
 0x1e9   : > { %v702_v43 = vpack.c.bf16 %v635_v41, %v632_v40 }
 0x1eb   : > { %952 = vmatprep.subr.bf16.mxu1 %v702_v43 }
 0x1ec   : > { %953 = vmatpush3.bf16.msra.mxu1 %v702_v43 }
 0x1ed   : > { %954 = vmatprep.subr.bf16.mxu1 %v703_v42 }
 0x1f0   : > { %955 = vmatpush3.bf16.msra.mxu1 %v703_v42 }
 0x1f3   : > { %957 = vmatmul.mubr.msk.bf16.vlgmr.msra.gmra.mrb[0].mxu1 %vm1190_vm9, %v987_v59 }
 0x1f4   : > { %960 = vmatprep.mubr.msk.bf16.mxu1 %vm1194_vm12, %v987_v59 }
 0x1fb   : > { %961 = vmatmul.mubr.msk.bf16.gmra.mrb[4].mxu1 %vm1198_vm15, %v987_v59  ;;  %v695_v59 = vld [vmem:[%s1281_s8 + $0x38] sm:$0xff] }
 0x2c6   : > { %v958_v46 = vpop.f32.mrb[0].mxu1 }
 0x2c7   : > { %v771_v48 = vadd.f32 %v958_v46, %v690_v44  ;;  %v738_v49 = vpop.f32.mrb[1].mxu1 }
 0x2c8   : > { %v769_v51 = vadd.f32 %v738_v49, %v688_v45  ;;  %v959_v52 = vpop.f32.mrb[2].mxu1 }
 0x2c9   : > { %779 = vst.msk [vmem:[%s1281_s8 + $0x10] sm:$0xff] %vm524_vm3, %v771_v48  ;;  %v772_v53 = vadd.f32 %v959_v52, %v691_v47  ;;  %v741_v54 = vpop.f32.mrb[3].mxu1 }
 0x2ca   : > { %777 = vst.msk [vmem:[%s1281_s8] sm:$0xff] %vm524_vm3, %v769_v51  ;;  %v770_v55 = vadd.f32 %v741_v54, %v689_v50 }
 0x2cb   : > { %780 = vst.msk [vmem:[%s1281_s8 + $0x18] sm:$0xff] %vm524_vm3, %v772_v53 }
 0x2cc   : > { %778 = vst.msk [vmem:[%s1281_s8 + $0x8] sm:$0xff] %vm524_vm3, %v770_v55 }
 0x2ce   : > { %v962_v58 = vpop.f32.mrb[4].mxu1 }
 0x2cf   : > { %v775_v60 = vadd.f32 %v962_v58, %v694_v56  ;;  %v754_v61 = vpop.f32.mrb[5].mxu1 }
 0x2d0   : > { %v773_v63 = vadd.f32 %v754_v61, %v692_v57  ;;  %v963_v0 = vpop.f32.mrb[6].mxu1 }
 0x2d1   : > { %783 = vst.msk [vmem:[%s1281_s8 + $0x30] sm:$0xff] %vm524_vm3, %v775_v60  ;;  %v776_v1 = vadd.f32 %v963_v0, %v695_v59  ;;  %v757_v2 = vpop.f32.mrb[7].mxu1 }
 0x2d2   : > { %781 = vst.msk [vmem:[%s1281_s8 + $0x20] sm:$0xff] %vm524_vm3, %v773_v63  ;;  %v774_v3 = vadd.f32 %v757_v2, %v693_v62 }
 0x2d3   : > { %784 = vst.msk [vmem:[%s1281_s8 + $0x38] sm:$0xff] %vm524_vm3, %v776_v1 }
 0x2d4   : > { %782 = vst.msk [vmem:[%s1281_s8 + $0x28] sm:$0xff] %vm524_vm3, %v774_v3 }
 0x2d5 PF: > { %s19_s27 = sadd.s32 1, %s984_s27  }
 0x2d6   : > { %p16_p6 = scmp.ge.s32.totalorder %s19_s27, 4  }
 0x2d8   :  { %18 = sbr.rel (!%p16_p6) target bundleno = 1 (0x1), region = 89 }

// kernel: mpnn_s2v_loop_forward.5
= control target key start
LH: loop header
LB: loop body
LE: loop exit
PB: predicated region body
PF: predicated region fallthrough
CT: control target
= control target key end

     0   :  { %vm39_vm0 = vcmask 261120   ;;  %s708_s21 = smov 32   ;;  %vm127_vm1 = vcmask 523264   ;;  %s709_s20 = smov 127   ;;  %vm501_vm10 = vcmask 7168   ;;  %vm542_vm11 = vcmask 15360   ;;  %s948_s1 = inlined_call_operand.vmem [shape: f32[2,64,32], index: 1, kind: input, shape index: {}]   ;;  %s949_s2 = inlined_call_operand.vmem [shape: f32[64,32], index: 2, kind: input, shape index: {}]   ;;  %s950_s0 = inlined_call_operand.vmem [shape: f32[64,32], index: 0, kind: input, shape index: {}]   ;;  %s951_s4 = inlined_call_operand.vmem [shape: f32[32,2], index: 4, kind: input, shape index: {}]   ;;  %s952_s3 = inlined_call_operand.vmem [shape: f32[1,32], index: 3, kind: input, shape index: {}]   ;;  %s953_s5 = inlined_call_operand.vmem [shape: f32[1,2], index: 5, kind: input, shape index: {}]   ;;  %s954_s6 = inlined_call_operand.vmem [shape: f32[64,2], index: 6, kind: output, shape index: {}]  }
   0x1   :  { %v23_v0 = vld [vmem:[%s948_s1] sm:$0xff]  ;;  %v25_v2 = vld [vmem:[%s948_s1 + $0x10] sm:$0xff]  ;;  %v24_v7 = vld [vmem:[%s948_s1 + $0x8] sm:$0xff] }
   0x2   :  { %v31_v1 = vld [vmem:[%s948_s1 + $0x40] sm:$0xff]  ;;  %v40_v3 = vsel %vm39_vm0, %v23_v0, 0.0  ;;  %v33_v5 = vld [vmem:[%s948_s1 + $0x50] sm:$0xff]  ;;  %v46_v6 = vsel %vm39_vm0, %v25_v2, 0.0  ;;  %v32_v8 = vld [vmem:[%s948_s1 + $0x48] sm:$0xff]  ;;  %v43_v11 = vsel %vm39_vm0, %v24_v7, 0.0 }
   0x3   :  { %v41_v4 = vsel %vm39_vm0, %v31_v1, 0.0  ;;  %v47_v10 = vsel %vm39_vm0, %v33_v5, 0.0  ;;  %v44_v12 = vsel %vm39_vm0, %v32_v8, 0.0  ;;  %v26_v13 = vld [vmem:[%s948_s1 + $0x18] sm:$0xff]  ;;  %v27_v15 = vld [vmem:[%s948_s1 + $0x20] sm:$0xff]  ;;  %v28_v20 = vld [vmem:[%s948_s1 + $0x28] sm:$0xff] }
   0x4   :  { %v42_v9 = vadd.f32 %v41_v4, %v40_v3  ;;  %v34_v14 = vld [vmem:[%s948_s1 + $0x58] sm:$0xff]  ;;  %v48_v16 = vadd.f32 %v47_v10, %v46_v6  ;;  %v49_v17 = vsel %vm39_vm0, %v26_v13, 0.0  ;;  %v35_v19 = vld [vmem:[%s948_s1 + $0x60] sm:$0xff]  ;;  %v36_v21 = vld [vmem:[%s948_s1 + $0x68] sm:$0xff]  ;;  %v45_v22 = vadd.f32 %v44_v12, %v43_v11 }
   0x5   :  { %v50_v18 = vsel %vm39_vm0, %v34_v14, 0.0  ;;  %v52_v24 = vsel %vm39_vm0, %v27_v15, 0.0  ;;  %v53_v25 = vsel %vm39_vm0, %v35_v19, 0.0  ;;  %v29_v26 = vld [vmem:[%s948_s1 + $0x30] sm:$0xff]  ;;  %v112_v27 = vld [vmem:[%s949_s2] sm:$0xff]  ;;  %v113_v28 = vld [vmem:[%s949_s2 + $0x8] sm:$0xff] }
   0x6   :  { %80 = vrot.lane.b32.xlu0 %v42_v9, %s708_s21  ;;  %84 = vrot.lane.b32.xlu1 %v48_v16, %s708_s21  ;;  %v51_v23 = vadd.f32 %v50_v18, %v49_v17  ;;  %v55_v29 = vsel %vm39_vm0, %v28_v20, 0.0  ;;  %v56_v30 = vsel %vm39_vm0, %v36_v21, 0.0  ;;  %v37_v31 = vld [vmem:[%s948_s1 + $0x70] sm:$0xff]  ;;  %v115_v33 = vld [vmem:[%s949_s2 + $0x18] sm:$0xff]  ;;  %v649_v36 = vpack.c.bf16 %v113_v28, %v112_v27 }
   0x7   :  { %v114_v32 = vld [vmem:[%s949_s2 + $0x10] sm:$0xff]  ;;  %v30_v34 = vld [vmem:[%s948_s1 + $0x38] sm:$0xff]  ;;  %v54_v38 = vadd.f32 %v53_v25, %v52_v24  ;;  %v116_v39 = vld [vmem:[%s949_s2 + $0x20] sm:$0xff]  ;;  %v57_v41 = vadd.f32 %v56_v30, %v55_v29  ;;  %v58_v42 = vsel %vm39_vm0, %v29_v26, 0.0  ;;  %v59_v43 = vsel %vm39_vm0, %v37_v31, 0.0 }
   0x8   :  { %v38_v35 = vld [vmem:[%s948_s1 + $0x78] sm:$0xff]  ;;  %v653_v37 = vpack.c.bf16 %v115_v33, %v114_v32  ;;  %v117_v40 = vld [vmem:[%s949_s2 + $0x28] sm:$0xff]  ;;  %650 = vmatprep.subr.bf16.mxu0 %v649_v36  ;;  %v61_v44 = vsel %vm39_vm0, %v30_v34, 0.0  ;;  %v60_v47 = vadd.f32 %v59_v43, %v58_v42  ;;  %v118_v48 = vld [vmem:[%s949_s2 + $0x30] sm:$0xff] }
   0x9   :  { %v62_v45 = vsel %vm39_vm0, %v38_v35, 0.0  ;;  %652 = vmatpush3.bf16.msra.mxu0 %v649_v36  ;;  %v657_v46 = vpack.c.bf16 %v117_v40, %v116_v39  ;;  %v119_v49 = vld [vmem:[%s949_s2 + $0x38] sm:$0xff]  ;;  %v64_v52 = vld [vmem:[%s950_s0] sm:$0xff]  ;;  %v66_v56 = vld [vmem:[%s950_s0 + $0x10] sm:$0xff] }
   0xa   :  { %82 = vrot.lane.b32.xlu0 %v45_v22, %s708_s21  ;;  %86 = vrot.lane.b32.xlu1 %v51_v23, %s708_s21  ;;  %v63_v50 = vadd.f32 %v62_v45, %v61_v44  ;;  %v661_v51 = vpack.c.bf16 %v119_v49, %v118_v48  ;;  %v65_v57 = vld [vmem:[%s950_s0 + $0x8] sm:$0xff]  ;;  %v67_v60 = vld [vmem:[%s950_s0 + $0x18] sm:$0xff] }
   0xb   :  { %654 = vmatprep.subr.bf16.mxu0 %v653_v37  ;;  %v68_v63 = vld [vmem:[%s950_s0 + $0x20] sm:$0xff]  ;;  %v69_v2 = vld [vmem:[%s950_s0 + $0x28] sm:$0xff]  ;;  %v70_v5 = vld [vmem:[%s950_s0 + $0x30] sm:$0xff] }
   0xc   :  { %v71_v8 = vld [vmem:[%s950_s0 + $0x38] sm:$0xff]  ;;  %v281_v12 = vld [vmem:[%s951_s4] sm:$0xff]  ;;  %v282_v13 = vld [vmem:[%s951_s4 + $0x8] sm:$0xff] }
   0xd   :  { %656 = vmatpush3.bf16.msra.mxu0 %v653_v37  ;;  %v665_v14 = vpack.c.bf16 %v282_v13, %v281_v12  ;;  %v283_v15 = vld [vmem:[%s951_s4 + $0x10] sm:$0xff]  ;;  %v284_v16 = vld [vmem:[%s951_s4 + $0x18] sm:$0xff]  ;;  %v555_v18 = vld [vmem:[%s952_s3] ss:$0 sm:$0xff] }
   0xe   :  { %88 = vrot.lane.b32.xlu0 %v54_v38, %s708_s21  ;;  %90 = vrot.lane.b32.xlu1 %v57_v41, %s708_s21  ;;  %v669_v17 = vpack.c.bf16 %v284_v16, %v283_v15 }
   0xf   :  { %658 = vmatprep.subr.bf16.mxu0 %v657_v46  ;;  %666 = vmatprep.subr.bf16.mxu1 %v665_v14 }
  0x10   :  { %668 = vmatpush3.bf16.msra.mxu1 %v665_v14 }
  0x11   :  { %660 = vmatpush3.bf16.msra.mxu0 %v657_v46  ;;  %670 = vmatprep.subr.bf16.mxu1 %v669_v17 }
  0x12   :  { %92 = vrot.lane.b32.xlu0 %v60_v47, %s708_s21  ;;  %94 = vrot.lane.b32.xlu1 %v63_v50, %s708_s21 }
  0x13   :  { %662 = vmatprep.subr.bf16.mxu0 %v661_v51 }
  0x14   :  { %672 = vmatpush3.bf16.msra.mxu1 %v669_v17 }
  0x15   :  { %664 = vmatpush3.bf16.msra.mxu0 %v661_v51  ;;  %v564_v51 = vld [vmem:[%s953_s5] ss:$0 sm:$0xff]  ;;  %s710_s5 = smov 1  }
  0x78   :  { %v81_v53 = vpop.permute.xlu0 %80  ;;  %v85_v55 = vpop.permute.xlu1 %84 }
  0x79   :  { %v104_v54 = vsel %vm39_vm0, %v64_v52, %v81_v53  ;;  %v106_v58 = vsel %vm39_vm0, %v66_v56, %v85_v55 }
  0x7a   :  { %617 = vmatprep.mubr.msk.f32.mxu0 %vm127_vm1, %v104_v54 }
  0x7c   :  { %v83_v59 = vpop.permute.xlu0 %82  ;;  %v87_v62 = vpop.permute.xlu1 %86 }
  0x7d   :  { %v105_v61 = vsel %vm39_vm0, %v65_v57, %v83_v59  ;;  %v107_v0 = vsel %vm39_vm0, %v67_v60, %v87_v62 }
  0x7e   :  { %618 = vmatmul.mubr.msk.f32.vlgmr.msra.gmra.mrb[0].mxu0 %vm127_vm1, %v105_v61 }
  0x7f   :  { %620 = vmatprep.mubr.msk.f32.mxu0 %vm127_vm1, %v106_v58 }
  0x80   :  { %v89_v1 = vpop.permute.xlu0 %88  ;;  %v91_v4 = vpop.permute.xlu1 %90 }
  0x81   :  { %v108_v3 = vsel %vm39_vm0, %v68_v63, %v89_v1  ;;  %v109_v6 = vsel %vm39_vm0, %v69_v2, %v91_v4 }
  0x82   :  { %621 = vmatmul.mubr.msk.f32.gmra.mrb[2].mxu0 %vm127_vm1, %v107_v0 }
  0x83   :  { %623 = vmatprep.mubr.msk.f32.mxu0 %vm127_vm1, %v108_v3 }
  0x84   :  { %v93_v7 = vpop.permute.xlu0 %92  ;;  %v95_v10 = vpop.permute.xlu1 %94 }
  0x85   :  { %v110_v9 = vsel %vm39_vm0, %v70_v5, %v93_v7  ;;  %v111_v11 = vsel %vm39_vm0, %v71_v8, %v95_v10 }
  0x86   :  { %624 = vmatmul.mubr.msk.f32.gmra.mrb[4].mxu0 %vm127_vm1, %v109_v6 }
  0x87   :  { %626 = vmatprep.mubr.msk.f32.mxu0 %vm127_vm1, %v110_v9 }
  0x8a   :  { %627 = vmatmul.mubr.msk.f32.gmra.mrb[6].mxu0 %vm127_vm1, %v111_v11 }
 0x151   :  { %v619_v19 = vpop.f32.mrb[0].mxu0 }
 0x152   :  { %v224_v20 = vadd.f32 %v619_v19, %v555_v18  ;;  %v218_v21 = vpop.f32.mrb[1].mxu0 }
 0x153   :  { %v219_v22 = vadd.f32 %v555_v18, %v218_v21 }
 0x154   :  { %v266_v23 = vmul.f32 0.01, %v224_v20  ;;  %vm258_vm2 = vcmp.gt.f32.partialorder %v224_v20, 0.0 }
 0x155   :  { %v622_v24 = vpop.f32.mrb[2].mxu0  ;;  %vm257_vm3 = vcmp.gt.f32.partialorder %v219_v22, 0.0  ;;  %v265_v25 = vmul.f32 0.01, %v219_v22 }
 0x156   :  { %v234_v26 = vadd.f32 %v622_v24, %v555_v18  ;;  %v228_v27 = vpop.f32.mrb[3].mxu0  ;;  %v274_v31 = vsel %vm258_vm2, %v224_v20, %v266_v23 }
 0x157   :  { %v229_v28 = vadd.f32 %v555_v18, %v228_v27  ;;  %v273_v29 = vsel %vm257_vm3, %v219_v22, %v265_v25 }
 0x158   :  { %v268_v30 = vmul.f32 0.01, %v234_v26  ;;  %637 = vmatprep.mubr.msk.f32.mxu1 %vm39_vm0, %v273_v29  ;;  %vm260_vm4 = vcmp.gt.f32.partialorder %v234_v26, 0.0 }
 0x159   :  { %vm259_vm5 = vcmp.gt.f32.partialorder %v229_v28, 0.0  ;;  %v267_v32 = vmul.f32 0.01, %v229_v28  ;;  %v625_v33 = vpop.f32.mrb[4].mxu0  ;;  %638 = vmatmul.mubr.msk.f32.vlgmr.msra.gmra.mrb[0].mxu1 %vm39_vm0, %v274_v31 }
 0x15a   :  { %v244_v34 = vadd.f32 %v625_v33, %v555_v18  ;;  %v238_v35 = vpop.f32.mrb[5].mxu0  ;;  %v276_v39 = vsel %vm260_vm4, %v234_v26, %v268_v30 }
 0x15b   :  { %v239_v36 = vadd.f32 %v555_v18, %v238_v35  ;;  %v275_v37 = vsel %vm259_vm5, %v229_v28, %v267_v32 }
 0x15c   :  { %v270_v38 = vmul.f32 0.01, %v244_v34  ;;  %640 = vmatprep.mubr.msk.f32.mxu1 %vm39_vm0, %v275_v37  ;;  %vm262_vm6 = vcmp.gt.f32.partialorder %v244_v34, 0.0 }
 0x15d   :  { %vm261_vm7 = vcmp.gt.f32.partialorder %v239_v36, 0.0  ;;  %v269_v40 = vmul.f32 0.01, %v239_v36  ;;  %v628_v41 = vpop.f32.mrb[6].mxu0  ;;  %641 = vmatmul.mubr.msk.f32.gmra.mrb[2].mxu1 %vm39_vm0, %v276_v39 }
 0x15e   :  { %v254_v42 = vadd.f32 %v628_v41, %v555_v18  ;;  %v248_v43 = vpop.f32.mrb[7].mxu0  ;;  %v278_v47 = vsel %vm262_vm6, %v244_v34, %v270_v38 }
 0x15f   :  { %v249_v44 = vadd.f32 %v555_v18, %v248_v43  ;;  %v277_v45 = vsel %vm261_vm7, %v239_v36, %v269_v40 }
 0x160   :  { %v272_v46 = vmul.f32 0.01, %v254_v42  ;;  %643 = vmatprep.mubr.msk.f32.mxu1 %vm39_vm0, %v277_v45  ;;  %vm264_vm8 = vcmp.gt.f32.partialorder %v254_v42, 0.0 }
 0x161   :  { %vm263_vm9 = vcmp.gt.f32.partialorder %v249_v44, 0.0  ;;  %v271_v48 = vmul.f32 0.01, %v249_v44  ;;  %644 = vmatmul.mubr.msk.f32.gmra.mrb[4].mxu1 %vm39_vm0, %v278_v47 }
 0x162   :  { %v280_v50 = vsel %vm264_vm8, %v254_v42, %v272_v46 }
 0x163   :  { %v279_v49 = vsel %vm263_vm9, %v249_v44, %v271_v48 }
 0x164   :  { %646 = vmatprep.mubr.msk.f32.mxu1 %vm39_vm0, %v279_v49 }
 0x165   :  { %647 = vmatmul.mubr.msk.f32.gmra.mrb[6].mxu1 %vm39_vm0, %v280_v50 }
 0x22c   :  { %v639_v52 = vpop.f32.mrb[0].mxu1 }
 0x22d   :  { %v388_v53 = vadd.f32 %v639_v52, %v564_v51  ;;  %v382_v54 = vpop.f32.mrb[1].mxu1 }
 0x22e   :  { %v383_v55 = vadd.f32 %v564_v51, %v382_v54 }
 0x22f   :  { %431 = vrot.lane.b32.xlu1 %v388_v53, %s709_s20 }
 0x230   :  { %v642_v56 = vpop.f32.mrb[2].mxu1  ;;  %429 = vrot.lane.b32.xlu0 %v383_v55, %s709_s20 }
 0x231   :  { %v398_v57 = vadd.f32 %v642_v56, %v564_v51  ;;  %v392_v58 = vpop.f32.mrb[3].mxu1 }
 0x232   :  { %v393_v59 = vadd.f32 %v564_v51, %v392_v58 }
 0x233   :  { %435 = vrot.lane.b32.xlu1 %v398_v57, %s709_s20 }
 0x234   :  { %v645_v60 = vpop.f32.mrb[4].mxu1  ;;  %433 = vrot.lane.b32.xlu0 %v393_v59, %s709_s20 }
 0x235   :  { %v408_v61 = vadd.f32 %v645_v60, %v564_v51  ;;  %v402_v62 = vpop.f32.mrb[5].mxu1 }
 0x236   :  { %v403_v63 = vadd.f32 %v564_v51, %v402_v62 }
 0x237   :  { %439 = vrot.lane.b32.xlu1 %v408_v61, %s709_s20 }
 0x238   :  { %v648_v0 = vpop.f32.mrb[6].mxu1  ;;  %437 = vrot.lane.b32.xlu0 %v403_v63, %s709_s20 }
 0x239   :  { %v418_v1 = vadd.f32 %v648_v0, %v564_v51  ;;  %v412_v2 = vpop.f32.mrb[7].mxu1 }
 0x23a   :  { %v413_v3 = vadd.f32 %v564_v51, %v412_v2 }
 0x23b   :  { %443 = vrot.lane.b32.xlu1 %v418_v1, %s709_s20 }
 0x23c   :  { %441 = vrot.lane.b32.xlu0 %v413_v3, %s709_s20 }
 0x2a1   :  { %v432_v4 = vpop.permute.xlu1 %431 }
 0x2a2   :  { %v454_v5 = vsub.f32 %v388_v53, %v432_v4  ;;  %v430_v6 = vpop.permute.xlu0 %429 }
 0x2a3   :  { %v453_v7 = vsub.f32 %v383_v55, %v430_v6 }
 0x2a4   :  { %479 = vrot.lane.b32.xlu1 %v454_v5, %s710_s5  ;;  %v462_v20 = vsub.f32 0.0, %v454_v5 }
 0x2a5   :  { %v436_v8 = vpop.permute.xlu1 %435  ;;  %477 = vrot.lane.b32.xlu0 %v453_v7, %s710_s5  ;;  %v461_v21 = vsub.f32 0.0, %v453_v7 }
 0x2a6   :  { %v456_v9 = vsub.f32 %v398_v57, %v436_v8  ;;  %v434_v10 = vpop.permute.xlu0 %433 }
 0x2a7   :  { %v455_v11 = vsub.f32 %v393_v59, %v434_v10 }
 0x2a8   :  { %483 = vrot.lane.b32.xlu1 %v456_v9, %s710_s5  ;;  %v464_v27 = vsub.f32 0.0, %v456_v9 }
 0x2a9   :  { %v440_v12 = vpop.permute.xlu1 %439  ;;  %481 = vrot.lane.b32.xlu0 %v455_v11, %s710_s5  ;;  %v463_v29 = vsub.f32 0.0, %v455_v11 }
 0x2aa   :  { %v458_v13 = vsub.f32 %v408_v61, %v440_v12  ;;  %v438_v14 = vpop.permute.xlu0 %437 }
 0x2ab   :  { %v457_v15 = vsub.f32 %v403_v63, %v438_v14 }
 0x2ac   :  { %487 = vrot.lane.b32.xlu1 %v458_v13, %s710_s5  ;;  %v466_v35 = vsub.f32 0.0, %v458_v13 }
 0x2ad   :  { %v444_v16 = vpop.permute.xlu1 %443  ;;  %485 = vrot.lane.b32.xlu0 %v457_v15, %s710_s5  ;;  %v465_v37 = vsub.f32 0.0, %v457_v15 }
 0x2ae   :  { %v460_v17 = vsub.f32 %v418_v1, %v444_v16  ;;  %v442_v18 = vpop.permute.xlu0 %441 }
 0x2af   :  { %v459_v19 = vsub.f32 %v413_v3, %v442_v18 }
 0x2b0   :  { %491 = vrot.lane.b32.xlu1 %v460_v17, %s710_s5  ;;  %v468_v43 = vsub.f32 0.0, %v460_v17 }
 0x2b1   :  { %489 = vrot.lane.b32.xlu0 %v459_v19, %s710_s5  ;;  %v467_v45 = vsub.f32 0.0, %v459_v19 }
 0x316   :  { %v480_v22 = vpop.permute.xlu1 %479 }
 0x317   :  { %v503_v23 = vsel %vm501_vm10, %v462_v20, %v480_v22  ;;  %v478_v24 = vpop.permute.xlu0 %477 }
 0x318   :  { %v512_v25 = vmul.f32 1.442695, %v503_v23  ;;  %v502_v26 = vsel %vm501_vm10, %v461_v21, %v478_v24 }
 0x319   :  { %v510_v28 = vmul.f32 1.442695, %v502_v26 }
 0x31a   :  { %676 = vpow2.f32 %v512_v25  ;;  %v484_v30 = vpop.permute.xlu1 %483 }
 0x31b   :  { %678 = vpow2.f32 %v510_v28  ;;  %v505_v31 = vsel %vm501_vm10, %v464_v27, %v484_v30  ;;  %v482_v32 = vpop.permute.xlu0 %481 }
 0x31c   :  { %v516_v33 = vmul.f32 1.442695, %v505_v31  ;;  %v504_v34 = vsel %vm501_vm10, %v463_v29, %v482_v32 }
 0x31d   :  { %v514_v36 = vmul.f32 1.442695, %v504_v34 }
 0x31e   :  { %680 = vpow2.f32 %v516_v33  ;;  %v488_v38 = vpop.permute.xlu1 %487 }
 0x31f   :  { %682 = vpow2.f32 %v514_v36  ;;  %v507_v39 = vsel %vm501_vm10, %v466_v35, %v488_v38  ;;  %v486_v40 = vpop.permute.xlu0 %485 }
 0x320   :  { %v520_v41 = vmul.f32 1.442695, %v507_v39  ;;  %v506_v42 = vsel %vm501_vm10, %v465_v37, %v486_v40 }
 0x321   :  { %v518_v44 = vmul.f32 1.442695, %v506_v42 }
 0x322   :  { %684 = vpow2.f32 %v520_v41  ;;  %v492_v46 = vpop.permute.xlu1 %491 }
 0x323   :  { %686 = vpow2.f32 %v518_v44  ;;  %v509_v47 = vsel %vm501_vm10, %v468_v43, %v492_v46  ;;  %v490_v48 = vpop.permute.xlu0 %489 }
 0x324   :  { %v677_v49 = vpop.eup %676  ;;  %v524_v50 = vmul.f32 1.442695, %v509_v47  ;;  %v508_v51 = vsel %vm501_vm10, %v467_v45, %v490_v48 }
 0x325   :  { %v679_v52 = vpop.eup %678  ;;  %v527_v53 = vadd.f32 1.0, %v677_v49  ;;  %v522_v54 = vmul.f32 1.442695, %v508_v51 }
 0x326   :  { %v526_v55 = vadd.f32 1.0, %v679_v52  ;;  %688 = vpow2.f32 %v524_v50 }
 0x327   :  { %690 = vrcp.f32 %v527_v53 }
 0x328   :  { %v681_v56 = vpop.eup %680  ;;  %692 = vrcp.f32 %v526_v55 }
 0x329   :  { %v683_v57 = vpop.eup %682  ;;  %v529_v58 = vadd.f32 1.0, %v681_v56  ;;  %694 = vpow2.f32 %v522_v54 }
 0x32a   :  { %v528_v59 = vadd.f32 1.0, %v683_v57 }
 0x32b   :  { %696 = vrcp.f32 %v529_v58 }
 0x32c   :  { %v685_v60 = vpop.eup %684  ;;  %698 = vrcp.f32 %v528_v59 }
 0x32d   :  { %v687_v61 = vpop.eup %686  ;;  %v531_v62 = vadd.f32 1.0, %v685_v60 }
 0x32e   :  { %v530_v63 = vadd.f32 1.0, %v687_v61 }
 0x32f   :  { %700 = vrcp.f32 %v531_v62 }
 0x330   :  { %v689_v0 = vpop.eup %688  ;;  %702 = vrcp.f32 %v530_v63 }
 0x331   :  { %v691_v1 = vpop.eup %690  ;;  %v533_v2 = vadd.f32 1.0, %v689_v0 }
 0x332   :  { %v693_v3 = vpop.eup %692  ;;  %544 = vst.msk [vmem:[%s954_s6 + $0x8] sm:$0xff] %vm542_vm11, %v691_v1 }
 0x333   :  { %v695_v4 = vpop.eup %694  ;;  %543 = vst.msk [vmem:[%s954_s6] sm:$0xff] %vm542_vm11, %v693_v3  ;;  %704 = vrcp.f32 %v533_v2 }
 0x334   :  { %v532_v5 = vadd.f32 1.0, %v695_v4 }
 0x335   :  { %v697_v6 = vpop.eup %696 }
 0x336   :  { %v699_v7 = vpop.eup %698  ;;  %546 = vst.msk [vmem:[%s954_s6 + $0x18] sm:$0xff] %vm542_vm11, %v697_v6  ;;  %706 = vrcp.f32 %v532_v5 }
 0x337   :  { %545 = vst.msk [vmem:[%s954_s6 + $0x10] sm:$0xff] %vm542_vm11, %v699_v7 }
 0x339   :  { %v701_v8 = vpop.eup %700 }
 0x33a   :  { %v703_v9 = vpop.eup %702  ;;  %548 = vst.msk [vmem:[%s954_s6 + $0x28] sm:$0xff] %vm542_vm11, %v701_v8 }
 0x33b   :  { %547 = vst.msk [vmem:[%s954_s6 + $0x20] sm:$0xff] %vm542_vm11, %v703_v9 }
 0x33d   :  { %v705_v10 = vpop.eup %704 }
 0x33e   :  { %550 = vst.msk [vmem:[%s954_s6 + $0x38] sm:$0xff] %vm542_vm11, %v705_v10 }
 0x340   :  { %v707_v11 = vpop.eup %706 }
 0x341   :  { %549 = vst.msk [vmem:[%s954_s6 + $0x30] sm:$0xff] %vm542_vm11, %v707_v11 }

// kernel: mpnn_s2v_loop_forward.4
= control target key start
LH: loop header
LB: loop body
LE: loop exit
PB: predicated region body
PF: predicated region fallthrough
CT: control target
= control target key end

     0   :  { %s2905_s29 = smov 0   ;;  %s2907_s30 = smov 0   ;;  %s3496_s0 = inlined_call_operand.vmem [shape: s32[256,1], index: 0, kind: input, shape index: {}]   ;;  %s3497_s1 = inlined_call_operand.vmem [shape: s32[1,256], index: 1, kind: input, shape index: {}]   ;;  %s3498_s2 = inlined_call_operand.vmem [shape: f32[256,32], index: 2, kind: input, shape index: {}, may-alias: {2,12}]   ;;  %s3499_s3 = inlined_call_operand.vmem [shape: bf16[64,64], index: 3, kind: input, shape index: {}]   ;;  %s3500_s4 = inlined_call_operand.vmem [shape: bf16[32,64], index: 4, kind: input, shape index: {}]   ;;  %s3501_s5 = inlined_call_operand.vmem [shape: f32[1,64], index: 5, kind: input, shape index: {}]   ;;  %s3502_s6 = inlined_call_operand.vmem [shape: bf16[64,64], index: 6, kind: input, shape index: {}]   ;;  %s3503_s7 = inlined_call_operand.vmem [shape: f32[1,64], index: 7, kind: input, shape index: {}]   ;;  %s3504_s8 = inlined_call_operand.vmem [shape: bf16[64,64], index: 8, kind: input, shape index: {}]   ;;  %s3505_s9 = inlined_call_operand.vmem [shape: f32[1,64], index: 9, kind: input, shape index: {}]   ;;  %s3506_s10 = inlined_call_operand.vmem [shape: f32[32,2], index: 10, kind: input, shape index: {}]   ;;  %s3507_s11 = inlined_call_operand.vmem [shape: f32[1,2], index: 11, kind: input, shape index: {}]   ;;  %s3508_s12 = inlined_call_operand.vmem [shape: f32[256,32], index: 12, kind: output, shape index: {0}, may-alias: {2,12}]   ;;  %s3509_s13 = inlined_call_operand.vmem [shape: f32[256,2], index: 13, kind: output, shape index: {1}]   ;;  %s3510_s14 = inlined_call_operand.vmem [shape: f32[2,64,32], index: 14, kind: output, shape index: {2}]  }
   0x1   :  { %s2909_s15 = smov 0  }
   0x2 LB: > { %s37_s16 = sadd.s32 1, %s2818_s30  ;;  %p2343_p0 = scmp.ge.s32.totalorder %s2822_s15, 1  ;;  %s2822_s15 = sphi %s2909_s15, %s25_s15   ;;  %s2818_s30 = sphi %s2907_s30, %s3512_s30   ;;  %s2814_s29 = sphi %s2905_s29, %s3511_s29  }
   0x3   : > { %p39_p1 = scmp.ge.s32.totalorder %s37_s16, 2  ;;  %p465_p2 = scmp.lt.s32.totalorder %s2822_s15, 3 }
   0x5   : > { %s3514_s16 = smov (%p39_p1, %s37_s16), 0  ;;  %p466_p3 = pnand %p2343_p0, %p465_p2 }
   0x6   : > { %s2344_s17 = sshll.u32 (!%p466_p3), %s2814_s29, 4  ;;  %v2824_v0 = vmov (!%p466_p3), 0   ;;  %v2722_v1 = vld [vmem:[%s3499_s3] sm:$0xff] (!%p466_p3)   ;;  %v2724_v3 = vld [vmem:[%s3499_s3 + $0x8] sm:$0xff] (!%p466_p3)   ;;  %v2726_v11 = vld [vmem:[%s3499_s3 + $0x10] sm:$0xff] (!%p466_p3)   ;;  %vm581_vm0 = vcmask (!%p466_p3), 261120   ;;  %v759_v50 = vlaneseq (!%p466_p3) }
   0x7   : > { %469 = sbr.rel (%p466_p3) target bundleno = 1440 (0x5a0), region = 68  ;;  %2721 = vset.pattern.permute.xlu1 (!%p466_p3), %v2824_v0  ;;  %2720 = vset.pattern.permute.xlu0 (!%p466_p3), %v2824_v0  ;;  %p536_p4 = scmp.lt.s32.totalorder (!%p466_p3), %s2344_s17, 31  ;;  %v2723_v2 = vld [vmem:[%s3500_s4] sm:$0xff] (!%p466_p3)   ;;  %v2725_v4 = vld [vmem:[%s3500_s4 + $0x8] sm:$0xff] (!%p466_p3)   ;;  %v2727_v18 = vld [vmem:[%s3499_s3 + $0x18] sm:$0xff] (!%p466_p3)   ;;  %vm913_vm5 = vcmask (!%p466_p3), 523264  }
   0x8   : > { %2554 = vmatprep.subr.bf16.mxu1 (!%p466_p3), %v2722_v1  ;;  %2534 = vmatprep.subr.bf16.mxu0 (!%p466_p3), %v2723_v2  ;;  %v2728_v47 = vld [vmem:[%s3502_s6] sm:$0xff] (!%p466_p3)   ;;  %v2729_v48 = vld [vmem:[%s3502_s6 + $0x8] sm:$0xff] (!%p466_p3)   ;;  %v2730_v49 = vld [vmem:[%s3502_s6 + $0x10] sm:$0xff] (!%p466_p3)   ;;  %v3008_v51 = vand.u32 (!%p466_p3), 127, %v759_v50  ;;  %v2825_v56 = vmov (!%p466_p3), 0.0   ;;  %s2826_s22 = smov (!%p466_p3), 96  }
   0x9   : > { %2555 = vmatpush3.bf16.msra.mxu1 (!%p466_p3), %v2722_v1  ;;  %2535 = vmatpush3.bf16.msra.mxu0 (!%p466_p3), %v2723_v2  ;;  %p543_p5 = scmp.lt.s32.totalorder (!%p466_p3), %s2814_s29, 1  ;;  %s2828_s23 = smov (!%p466_p3), 127  }
   0xa   : > { %2556 = vmatprep.subr.bf16.mxu1 (!%p466_p3), %v2724_v3  ;;  %2536 = vmatprep.subr.bf16.mxu0 (!%p466_p3), %v2725_v4  ;;  %s2829_s25 = smov (!%p466_p3), 1  }
   0xd   : > { %2557 = vmatpush3.bf16.msra.mxu1 (!%p466_p3), %v2724_v3  ;;  %2537 = vmatpush3.bf16.msra.mxu0 (!%p466_p3), %v2725_v4 }
   0xe   : > { %s3516_s17 = smov (!%p536_p4, %s2344_s17), 31  ;;  %2558 = vmatprep.subr.bf16.mxu1 %v2726_v11  ;;  %2578 = vmatprep.subr.bf16.mxu0 %v2728_v47  ;;  %s3518_s29 = smov (!%p543_p5, %s2814_s29), 1 }
   0xf   : > { %s2935_s24 = sshll.u32 %s3516_s17, 3  ;;  %s545_s17 = scalar_lea.vmem %s3497_s1, %s3518_s29 }
  0x10   : > { %s2941_s27 = scalar_lea.vmem %s3496_s0, %s2935_s24  ;;  %s2952_s20 = scalar_lea.vmem %s3498_s2, %s2935_s24 }
  0x11   : > { %v763_v5 = vld [vmem:[%s2941_s27 + $0x10] sm:$0xff]  ;;  %v761_v6 = vld [vmem:[%s2941_s27] sm:$0xff]  ;;  %v764_v7 = vld [vmem:[%s2941_s27 + $0x18] sm:$0xff]  ;;  %2559 = vmatpush3.bf16.msra.mxu1 %v2726_v11  ;;  %s3209_s26 = scalar_lea.vmem %s3508_s12, %s2935_s24  ;;  %s3447_s18 = scalar_lea.vmem %s3509_s13, %s2935_s24 }
  0x12   : > { %784 = vperm.xlu1 %2721, %v763_v5   ;;  %778 = vperm.xlu0 %2720, %v761_v6   ;;  %v762_v8 = vld [vmem:[%s2941_s27 + $0x8] sm:$0xff]  ;;  %v765_v10 = vld [vmem:[%s2941_s27 + $0x20] sm:$0xff]  ;;  %v592_v14 = vld [vmem:[%s2952_s20 + $0x10] sm:$0xff] }
  0x13   : > { %v766_v9 = vld [vmem:[%s2941_s27 + $0x28] sm:$0xff]  ;;  %v590_v12 = vld [vmem:[%s2952_s20] sm:$0xff]  ;;  %v593_v15 = vld [vmem:[%s2952_s20 + $0x18] sm:$0xff]  ;;  %2560 = vmatprep.subr.bf16.mxu1 %v2727_v18 }
  0x14   : > { %v591_v13 = vld [vmem:[%s2952_s20 + $0x8] sm:$0xff]  ;;  %v607_v17 = vpack.c.bf16 %v593_v15, %v592_v14  ;;  %v768_v19 = vld [vmem:[%s2941_s27 + $0x38] sm:$0xff]  ;;  %v767_v20 = vld [vmem:[%s2941_s27 + $0x30] sm:$0xff] }
  0x15   : > { %v606_v16 = vpack.c.bf16 %v591_v13, %v590_v12  ;;  %v594_v21 = vld [vmem:[%s2952_s20 + $0x20] sm:$0xff]  ;;  %v595_v22 = vld [vmem:[%s2952_s20 + $0x28] sm:$0xff]  ;;  %v596_v24 = vld [vmem:[%s2952_s20 + $0x30] sm:$0xff]  ;;  %2561 = vmatpush3.bf16.msra.mxu1 %v2727_v18 }
  0x16   : > { %787 = vperm.xlu1 %2721, %v764_v7   ;;  %781 = vperm.xlu0 %2720, %v762_v8   ;;  %v608_v23 = vpack.c.bf16 %v595_v22, %v594_v21  ;;  %v597_v25 = vld [vmem:[%s2952_s20 + $0x38] sm:$0xff]  ;;  %v770_v26 = vld [vmem:[%s2941_s27 + $0x48] sm:$0xff]  ;;  %v769_v27 = vld [vmem:[%s2941_s27 + $0x40] sm:$0xff] }
  0x17   : > { %2538 = vmatprep.mubr.msk.bf16.mxu0 %vm581_vm0, %v606_v16  ;;  %v609_v28 = vpack.c.bf16 %v597_v25, %v596_v24  ;;  %v598_v29 = vld [vmem:[%s2952_s20 + $0x40] sm:$0xff]  ;;  %v599_v30 = vld [vmem:[%s2952_s20 + $0x48] sm:$0xff]  ;;  %v772_v31 = vld [vmem:[%s2941_s27 + $0x58] sm:$0xff] }
  0x18   : > { %2539 = vmatmul.mubr.msk.bf16.vlgmr.msra.gmra.mrb[0].mxu0 %vm581_vm0, %v607_v17  ;;  %v771_v32 = vld [vmem:[%s2941_s27 + $0x50] sm:$0xff]  ;;  %v610_v33 = vpack.c.bf16 %v599_v30, %v598_v29  ;;  %v601_v35 = vld [vmem:[%s2952_s20 + $0x58] sm:$0xff]  ;;  %v774_v36 = vld [vmem:[%s2941_s27 + $0x68] sm:$0xff] }
  0x19   : > { %2542 = vmatprep.mubr.msk.bf16.mxu0 %vm581_vm0, %v608_v23  ;;  %v600_v34 = vld [vmem:[%s2952_s20 + $0x50] sm:$0xff]  ;;  %v773_v37 = vld [vmem:[%s2941_s27 + $0x60] sm:$0xff]  ;;  %v603_v40 = vld [vmem:[%s2952_s20 + $0x68] sm:$0xff]  ;;  %2579 = vmatpush3.bf16.msra.mxu0 %v2728_v47 }
  0x1a   : > { %793 = vperm.xlu1 %2721, %v766_v9   ;;  %790 = vperm.xlu0 %2720, %v765_v10   ;;  %v611_v38 = vpack.c.bf16 %v601_v35, %v600_v34  ;;  %v602_v39 = vld [vmem:[%s2952_s20 + $0x60] sm:$0xff]  ;;  %v776_v41 = vld [vmem:[%s2941_s27 + $0x78] sm:$0xff]  ;;  %v775_v42 = vld [vmem:[%s2941_s27 + $0x70] sm:$0xff]  ;;  %s2455_s27 = sshll.u32 %s3518_s29, 6 }
  0x1b   : > { %v612_v43 = vpack.c.bf16 %v603_v40, %v602_v39  ;;  %v604_v44 = vld [vmem:[%s2952_s20 + $0x70] sm:$0xff]  ;;  %v605_v45 = vld [vmem:[%s2952_s20 + $0x78] sm:$0xff]  ;;  %2580 = vmatprep.subr.bf16.mxu0 %v2729_v48  ;;  %v2733_v47 = vld [vmem:[%s3504_s8 + $0x8] sm:$0xff]   ;;  %s3284_s21 = scalar_lea.vmem %s3510_s14, %s2455_s27 }
  0x1c   : > { %v613_v46 = vpack.c.bf16 %v605_v45, %v604_v44  ;;  %v2731_v30 = vld [vmem:[%s3502_s6 + $0x18] sm:$0xff]   ;;  %582 = vst.msk [vmem:[%s3284_s21] sm:$0xff] %vm581_vm0, %v2825_v56  ;;  %583 = vst.msk [vmem:[%s3284_s21 + $0x8] sm:$0xff] %vm581_vm0, %v2825_v56 }
  0x1d   : > { %2581 = vmatpush3.bf16.msra.mxu0 %v2729_v48  ;;  %v2734_v48 = vld [vmem:[%s3504_s8 + $0x10] sm:$0xff]   ;;  %584 = vst.msk [vmem:[%s3284_s21 + $0x10] sm:$0xff] %vm581_vm0, %v2825_v56  ;;  %585 = vst.msk [vmem:[%s3284_s21 + $0x18] sm:$0xff] %vm581_vm0, %v2825_v56 }
  0x1e   : > { %799 = vperm.xlu1 %2721, %v768_v19   ;;  %796 = vperm.xlu0 %2720, %v767_v20   ;;  %586 = vst.msk [vmem:[%s3284_s21 + $0x20] sm:$0xff] %vm581_vm0, %v2825_v56  ;;  %587 = vst.msk [vmem:[%s3284_s21 + $0x28] sm:$0xff] %vm581_vm0, %v2825_v56 }
  0x1f   : > { %2582 = vmatprep.subr.bf16.mxu0 %v2730_v49  ;;  %588 = vst.msk [vmem:[%s3284_s21 + $0x30] sm:$0xff] %vm581_vm0, %v2825_v56  ;;  %589 = vst.msk [vmem:[%s3284_s21 + $0x38] sm:$0xff] %vm581_vm0, %v2825_v56 }
  0x20   : > { %2543 = vmatmul.mubr.msk.bf16.gmra.mrb[4].mxu0 %vm581_vm0, %v609_v28 }
  0x21   : > { %2546 = vmatprep.mubr.msk.bf16.mxu0 %vm581_vm0, %v610_v33  ;;  %2583 = vmatpush3.bf16.msra.mxu0 %v2730_v49  ;;  %v2354_v49 = vld [vmem:[%s3501_s5] ss:$0 sm:$0xff] }
  0x22   : > { %805 = vperm.xlu1 %2721, %v770_v26   ;;  %802 = vperm.xlu0 %2720, %v769_v27  }
  0x23   : > { %2584 = vmatprep.subr.bf16.mxu0 %v2731_v30 }
  0x25   : > { %2585 = vmatpush3.bf16.msra.mxu0 %v2731_v30 }
  0x26   : > { %811 = vperm.xlu1 %2721, %v772_v31   ;;  %808 = vperm.xlu0 %2720, %v771_v32  }
  0x28   : > { %2547 = vmatmul.mubr.msk.bf16.gmra.mrb[8].mxu0 %vm581_vm0, %v611_v38 }
  0x29   : > { %2550 = vmatprep.mubr.msk.bf16.mxu0 %vm581_vm0, %v612_v43 }
  0x2a   : > { %817 = vperm.xlu1 %2721, %v774_v36   ;;  %814 = vperm.xlu0 %2720, %v773_v37  }
  0x2e   : > { %823 = vperm.xlu1 %2721, %v776_v41   ;;  %820 = vperm.xlu0 %2720, %v775_v42  }
  0x30   : > { %2551 = vmatmul.mubr.msk.bf16.gmra.mrb[12].mxu0 %vm581_vm0, %v613_v46  ;;  %v2732_v46 = vld [vmem:[%s3504_s8] sm:$0xff]  }
  0x31   : > { %2602 = vmatprep.subr.bf16.mxu1 %v2732_v46 }
  0x91   : > { %v785_v52 = vpop.permute.xlu1 %784  ;;  %v779_v53 = vpop.permute.xlu0 %778 }
  0x92   : > { %vm827_vm1 = vcmp.eq.s32.totalorder %v3008_v51, %v785_v52  ;;  %vm825_vm2 = vcmp.eq.s32.totalorder %v3008_v51, %v779_v53 }
  0x93   : > { %v2367_v57 = vsel %vm827_vm1, 1.0, %v2825_v56  ;;  %v2365_v58 = vsel %vm825_vm2, 1.0, %v2825_v56 }
  0x95   : > { %v788_v54 = vpop.permute.xlu1 %787  ;;  %v782_v55 = vpop.permute.xlu0 %781 }
  0x96   : > { %vm828_vm3 = vcmp.eq.s32.totalorder %v3008_v51, %v788_v54  ;;  %vm826_vm4 = vcmp.eq.s32.totalorder %v3008_v51, %v782_v55 }
  0x97   : > { %v2368_v59 = vsel %vm828_vm3, 1.0, %v2825_v56  ;;  %v2366_v60 = vsel %vm826_vm4, 1.0, %v2825_v56 }
  0x98   : > { %v874_v61 = vpack.c.bf16 %v2368_v59, %v2367_v57  ;;  %v873_v62 = vpack.c.bf16 %v2366_v60, %v2365_v58 }
  0x99   : > { %v794_v63 = vpop.permute.xlu1 %793  ;;  %v791_v0 = vpop.permute.xlu0 %790 }
  0x9a   : > { %vm830_vm6 = vcmp.eq.s32.totalorder %v3008_v51, %v794_v63  ;;  %vm829_vm7 = vcmp.eq.s32.totalorder %v3008_v51, %v791_v0  ;;  %2562 = vmatprep.mubr.msk.bf16.mxu1 %vm913_vm5, %v873_v62 }
  0x9b   : > { %v2370_v1 = vsel %vm830_vm6, 1.0, %v2825_v56  ;;  %v2369_v2 = vsel %vm829_vm7, 1.0, %v2825_v56  ;;  %2563 = vmatmul.mubr.msk.bf16.vlgmr.msra.gmra.mrb[0].mxu1 %vm913_vm5, %v874_v61 }
  0x9c   : > { %v875_v3 = vpack.c.bf16 %v2370_v1, %v2369_v2  ;;  %2603 = vmatpush3.bf16.msra.mxu1 %v2732_v46 }
  0x9d   : > { %v800_v4 = vpop.permute.xlu1 %799  ;;  %v797_v5 = vpop.permute.xlu0 %796  ;;  %2604 = vmatprep.subr.bf16.mxu1 %v2733_v47 }
  0x9e   : > { %vm832_vm8 = vcmp.eq.s32.totalorder %v3008_v51, %v800_v4  ;;  %vm831_vm9 = vcmp.eq.s32.totalorder %v3008_v51, %v797_v5  ;;  %2566 = vmatprep.mubr.msk.bf16.mxu1 %vm913_vm5, %v875_v3 }
  0x9f   : > { %v2372_v6 = vsel %vm832_vm8, 1.0, %v2825_v56  ;;  %v2371_v7 = vsel %vm831_vm9, 1.0, %v2825_v56 }
  0xa0   : > { %v876_v8 = vpack.c.bf16 %v2372_v6, %v2371_v7  ;;  %2605 = vmatpush3.bf16.msra.mxu1 %v2733_v47 }
  0xa1   : > { %v806_v9 = vpop.permute.xlu1 %805  ;;  %v803_v10 = vpop.permute.xlu0 %802  ;;  %2606 = vmatprep.subr.bf16.mxu1 %v2734_v48 }
  0xa2   : > { %vm834_vm10 = vcmp.eq.s32.totalorder %v3008_v51, %v806_v9  ;;  %vm833_vm11 = vcmp.eq.s32.totalorder %v3008_v51, %v803_v10 }
  0xa3   : > { %v2374_v11 = vsel %vm834_vm10, 1.0, %v2825_v56  ;;  %v2373_v12 = vsel %vm833_vm11, 1.0, %v2825_v56  ;;  %2567 = vmatmul.mubr.msk.bf16.gmra.mrb[4].mxu1 %vm913_vm5, %v876_v8 }
  0xa4   : > { %v877_v13 = vpack.c.bf16 %v2374_v11, %v2373_v12  ;;  %2607 = vmatpush3.bf16.msra.mxu1 %v2734_v48 }
  0xa5   : > { %v812_v14 = vpop.permute.xlu1 %811  ;;  %v809_v15 = vpop.permute.xlu0 %808 }
  0xa6   : > { %vm836_vm12 = vcmp.eq.s32.totalorder %v3008_v51, %v812_v14  ;;  %vm835_vm13 = vcmp.eq.s32.totalorder %v3008_v51, %v809_v15  ;;  %2570 = vmatprep.mubr.msk.bf16.mxu1 %vm913_vm5, %v877_v13 }
  0xa7   : > { %v2376_v16 = vsel %vm836_vm12, 1.0, %v2825_v56  ;;  %v2375_v17 = vsel %vm835_vm13, 1.0, %v2825_v56 }
  0xa8   : > { %v878_v18 = vpack.c.bf16 %v2376_v16, %v2375_v17 }
  0xa9   : > { %v818_v19 = vpop.permute.xlu1 %817  ;;  %v815_v20 = vpop.permute.xlu0 %814 }
  0xaa   : > { %vm838_vm14 = vcmp.eq.s32.totalorder %v3008_v51, %v818_v19  ;;  %vm837_vm15 = vcmp.eq.s32.totalorder %v3008_v51, %v815_v20 }
  0xab   : > { %v2378_v21 = vsel %vm838_vm14, 1.0, %v2825_v56  ;;  %v2377_v22 = vsel %vm837_vm15, 1.0, %v2825_v56  ;;  %2571 = vmatmul.mubr.msk.bf16.gmra.mrb[8].mxu1 %vm913_vm5, %v878_v18 }
  0xac   : > { %v879_v23 = vpack.c.bf16 %v2378_v21, %v2377_v22 }
  0xad   : > { %v824_v24 = vpop.permute.xlu1 %823  ;;  %v821_v25 = vpop.permute.xlu0 %820 }
  0xae   : > { %vm840_vm1 = vcmp.eq.s32.totalorder %v3008_v51, %v824_v24  ;;  %vm839_vm2 = vcmp.eq.s32.totalorder %v3008_v51, %v821_v25  ;;  %2574 = vmatprep.mubr.msk.bf16.mxu1 %vm913_vm5, %v879_v23 }
  0xaf   : > { %v2380_v26 = vsel %vm840_vm1, 1.0, %v2825_v56  ;;  %v2379_v27 = vsel %vm839_vm2, 1.0, %v2825_v56  ;;  %v2419_v56 = vld [vmem:[%s3507_s11] ss:$0 sm:$0xff] }
  0xb0   : > { %v880_v28 = vpack.c.bf16 %v2380_v26, %v2379_v27 }
  0xb3   : > { %2575 = vmatmul.mubr.msk.bf16.gmra.mrb[12].mxu1 %vm913_vm5, %v880_v28 }
  0xeb   : > { %v2540_v29 = vpop.f32.mrb[0].mxu0 }
  0xec   : > { %v696_v31 = vpop.f32.mrb[1].mxu0  ;;  %v705_v51 = vadd.f32 %v2540_v29, %v2354_v49 }
  0xed   : > { %v2541_v32 = vpop.f32.mrb[2].mxu0  ;;  %v697_v52 = vadd.f32 %v2354_v49, %v696_v31 }
  0xee   : > { %v699_v33 = vpop.f32.mrb[3].mxu0  ;;  %v708_v54 = vadd.f32 %v2541_v32, %v2354_v49 }
  0xef   : > { %v700_v58 = vadd.f32 %v2354_v49, %v699_v33 }
  0xf3   : > { %v2544_v34 = vpop.f32.mrb[4].mxu0 }
  0xf4   : > { %v712_v35 = vpop.f32.mrb[5].mxu0  ;;  %v721_v1 = vadd.f32 %v2544_v34, %v2354_v49 }
  0xf5   : > { %v2545_v36 = vpop.f32.mrb[6].mxu0  ;;  %v713_v3 = vadd.f32 %v2354_v49, %v712_v35 }
  0xf6   : > { %v715_v37 = vpop.f32.mrb[7].mxu0  ;;  %v724_v5 = vadd.f32 %v2545_v36, %v2354_v49 }
  0xf7   : > { %v716_v8 = vadd.f32 %v2354_v49, %v715_v37 }
  0xfb   : > { %v2548_v38 = vpop.f32.mrb[8].mxu0 }
  0xfc   : > { %v728_v39 = vpop.f32.mrb[9].mxu0  ;;  %v737_v15 = vadd.f32 %v2548_v38, %v2354_v49 }
  0xfd   : > { %v2549_v40 = vpop.f32.mrb[10].mxu0  ;;  %v729_v17 = vadd.f32 %v2354_v49, %v728_v39 }
  0xfe   : > { %v731_v41 = vpop.f32.mrb[11].mxu0  ;;  %v740_v19 = vadd.f32 %v2549_v40, %v2354_v49 }
  0xff   : > { %v732_v22 = vadd.f32 %v2354_v49, %v731_v41 }
 0x103   : > { %v2552_v42 = vpop.f32.mrb[12].mxu0 }
 0x104   : > { %v744_v43 = vpop.f32.mrb[13].mxu0  ;;  %v753_v29 = vadd.f32 %v2552_v42, %v2354_v49  ;;  %v2735_v42 = vld [vmem:[%s3504_s8 + $0x18] sm:$0xff]  }
 0x105   : > { %v2553_v44 = vpop.f32.mrb[14].mxu0  ;;  %v745_v31 = vadd.f32 %v2354_v49, %v744_v43  ;;  %2608 = vmatprep.subr.bf16.mxu1 %v2735_v42  ;;  %v3082_v43 = vld [vmem:[%s3503_s7] ss:$0 sm:$0xff] }
 0x106   : > { %v3053_v45 = vpop.f32.mrb[15].mxu0  ;;  %v756_v33 = vadd.f32 %v2553_v44, %v2354_v49  ;;  %2609 = vmatpush3.bf16.msra.mxu1 %v2735_v42 }
 0x107   : > { %v748_v36 = vadd.f32 %v2354_v49, %v3053_v45 }
 0x16e   : > { %v2564_v53 = vpop.f32.mrb[0].mxu1 }
 0x16f   : > { %v1037_v55 = vsub.f32 %v2564_v53, %v705_v51  ;;  %v972_v57 = vpop.f32.mrb[1].mxu1 }
 0x170   : > { %v1035_v59 = vsub.f32 %v972_v57, %v697_v52  ;;  %v2565_v60 = vpop.f32.mrb[2].mxu1 }
 0x171   : > { %v1038_v61 = vsub.f32 %v2565_v60, %v708_v54  ;;  %v975_v62 = vpop.f32.mrb[3].mxu1 }
 0x172   : > { %v1036_v63 = vsub.f32 %v975_v62, %v700_v58 }
 0x173   : > { %v1052_v0 = vpack.c.bf16 %v1038_v61, %v1037_v55 }
 0x174   : > { %v1051_v2 = vpack.c.bf16 %v1036_v63, %v1035_v59 }
 0x176   : > { %v2568_v4 = vpop.f32.mrb[4].mxu1  ;;  %2586 = vmatprep.mubr.msk.bf16.mxu0 %vm913_vm5, %v1051_v2 }
 0x177   : > { %v1041_v6 = vsub.f32 %v2568_v4, %v721_v1  ;;  %v988_v7 = vpop.f32.mrb[5].mxu1  ;;  %2587 = vmatmul.mubr.msk.bf16.vlgmr.msra.gmra.mrb[16].mxu0 %vm913_vm5, %v1052_v0 }
 0x178   : > { %v1039_v9 = vsub.f32 %v988_v7, %v713_v3  ;;  %v2569_v10 = vpop.f32.mrb[6].mxu1 }
 0x179   : > { %v1042_v11 = vsub.f32 %v2569_v10, %v724_v5  ;;  %v991_v12 = vpop.f32.mrb[7].mxu1 }
 0x17a   : > { %v1040_v13 = vsub.f32 %v991_v12, %v716_v8 }
 0x17b   : > { %v1054_v14 = vpack.c.bf16 %v1042_v11, %v1041_v6 }
 0x17c   : > { %v1053_v16 = vpack.c.bf16 %v1040_v13, %v1039_v9 }
 0x17e   : > { %v2572_v18 = vpop.f32.mrb[8].mxu1  ;;  %2590 = vmatprep.mubr.msk.bf16.mxu0 %vm913_vm5, %v1053_v16 }
 0x17f   : > { %v1045_v20 = vsub.f32 %v2572_v18, %v737_v15  ;;  %v1004_v21 = vpop.f32.mrb[9].mxu1  ;;  %2591 = vmatmul.mubr.msk.bf16.gmra.mrb[20].mxu0 %vm913_vm5, %v1054_v14 }
 0x180   : > { %v1043_v23 = vsub.f32 %v1004_v21, %v729_v17  ;;  %v2573_v24 = vpop.f32.mrb[10].mxu1 }
 0x181   : > { %v1046_v25 = vsub.f32 %v2573_v24, %v740_v19  ;;  %v1007_v26 = vpop.f32.mrb[11].mxu1 }
 0x182   : > { %v1044_v27 = vsub.f32 %v1007_v26, %v732_v22 }
 0x183   : > { %v1056_v28 = vpack.c.bf16 %v1046_v25, %v1045_v20 }
 0x184   : > { %v1055_v30 = vpack.c.bf16 %v1044_v27, %v1043_v23 }
 0x186   : > { %v2576_v32 = vpop.f32.mrb[12].mxu1  ;;  %2594 = vmatprep.mubr.msk.bf16.mxu0 %vm913_vm5, %v1055_v30 }
 0x187   : > { %v1049_v34 = vsub.f32 %v2576_v32, %v753_v29  ;;  %v1020_v35 = vpop.f32.mrb[13].mxu1  ;;  %2595 = vmatmul.mubr.msk.bf16.gmra.mrb[24].mxu0 %vm913_vm5, %v1056_v28 }
 0x188   : > { %v1047_v37 = vsub.f32 %v1020_v35, %v745_v31  ;;  %v2577_v38 = vpop.f32.mrb[14].mxu1 }
 0x189   : > { %v1050_v39 = vsub.f32 %v2577_v38, %v756_v33  ;;  %v1023_v40 = vpop.f32.mrb[15].mxu1 }
 0x18a   : > { %v1048_v41 = vsub.f32 %v1023_v40, %v748_v36 }
 0x18b   : > { %v1058_v46 = vpack.c.bf16 %v1050_v39, %v1049_v34 }
 0x18c   : > { %v1057_v47 = vpack.c.bf16 %v1048_v41, %v1047_v37 }
 0x18e   : > { %2598 = vmatprep.mubr.msk.bf16.mxu0 %vm913_vm5, %v1057_v47 }
 0x18f   : > { %2599 = vmatmul.mubr.msk.bf16.gmra.mrb[28].mxu0 %vm913_vm5, %v1058_v46 }
 0x24a   : > { %v2588_v44 = vpop.f32.mrb[16].mxu0 }
 0x24b   : > { %v1165_v45 = vadd.f32 %v2588_v44, %v3082_v43  ;;  %v1156_v48 = vpop.f32.mrb[17].mxu0 }
 0x24c   : > { %v1157_v49 = vadd.f32 %v3082_v43, %v1156_v48  ;;  %v2589_v51 = vpop.f32.mrb[18].mxu0 }
 0x24d   : > { %v1237_v52 = vmul.f32 0.01, %v1165_v45  ;;  %v1168_v53 = vadd.f32 %v2589_v51, %v3082_v43  ;;  %v1159_v54 = vpop.f32.mrb[19].mxu0  ;;  %vm1221_vm3 = vcmp.gt.f32.partialorder %v1165_v45, 0.0 }
 0x24e   : > { %v1235_v55 = vmul.f32 0.01, %v1157_v49  ;;  %v1160_v57 = vadd.f32 %v3082_v43, %v1159_v54  ;;  %vm1219_vm4 = vcmp.gt.f32.partialorder %v1157_v49, 0.0 }
 0x24f   : > { %vm1222_vm6 = vcmp.gt.f32.partialorder %v1168_v53, 0.0  ;;  %v1238_v58 = vmul.f32 0.01, %v1168_v53  ;;  %v1253_v60 = vsel %vm1221_vm3, %v1165_v45, %v1237_v52 }
 0x250   : > { %vm1220_vm7 = vcmp.gt.f32.partialorder %v1160_v57, 0.0  ;;  %v1236_v59 = vmul.f32 0.01, %v1160_v57  ;;  %v1251_v62 = vsel %vm1219_vm4, %v1157_v49, %v1235_v55 }
 0x251   : > { %v1254_v61 = vsel %vm1222_vm6, %v1168_v53, %v1238_v58 }
 0x252   : > { %v1268_v63 = vpack.c.bf16 %v1254_v61, %v1253_v60  ;;  %v1252_v0 = vsel %vm1220_vm7, %v1160_v57, %v1236_v59  ;;  %v2592_v1 = vpop.f32.mrb[20].mxu0  ;;  %v1580_v59 = vld [vmem:[%s3506_s10 + $0x8] sm:$0xff]  ;;  %v1581_v60 = vld [vmem:[%s3506_s10 + $0x10] sm:$0xff] }
 0x253   : > { %v1267_v2 = vpack.c.bf16 %v1252_v0, %v1251_v62  ;;  %v1181_v3 = vadd.f32 %v2592_v1, %v3082_v43  ;;  %v1172_v4 = vpop.f32.mrb[21].mxu0  ;;  %v1582_v62 = vld [vmem:[%s3506_s10 + $0x18] sm:$0xff]  ;;  %v3123_v0 = vld [vmem:[%s3505_s9] ss:$0 sm:$0xff] }
 0x254   : > { %v1173_v5 = vadd.f32 %v3082_v43, %v1172_v4  ;;  %v2593_v6 = vpop.f32.mrb[22].mxu0 }
 0x255   : > { %v1241_v7 = vmul.f32 0.01, %v1181_v3  ;;  %v1184_v8 = vadd.f32 %v2593_v6, %v3082_v43  ;;  %v1175_v9 = vpop.f32.mrb[23].mxu0  ;;  %2610 = vmatprep.mubr.msk.bf16.mxu1 %vm913_vm5, %v1267_v2  ;;  %vm1225_vm8 = vcmp.gt.f32.partialorder %v1181_v3, 0.0 }
 0x256   : > { %v1239_v10 = vmul.f32 0.01, %v1173_v5  ;;  %v1176_v11 = vadd.f32 %v3082_v43, %v1175_v9  ;;  %2611 = vmatmul.mubr.msk.bf16.vlgmr.msra.gmra.mrb[16].mxu1 %vm913_vm5, %v1268_v63  ;;  %vm1223_vm9 = vcmp.gt.f32.partialorder %v1173_v5, 0.0  ;;  %v2686_v63 = vpack.c.bf16 %v1582_v62, %v1581_v60 }
 0x257   : > { %vm1226_vm10 = vcmp.gt.f32.partialorder %v1184_v8, 0.0  ;;  %v1242_v12 = vmul.f32 0.01, %v1184_v8  ;;  %v1257_v14 = vsel %vm1225_vm8, %v1181_v3, %v1241_v7 }
 0x258   : > { %vm1224_vm11 = vcmp.gt.f32.partialorder %v1176_v11, 0.0  ;;  %v1240_v13 = vmul.f32 0.01, %v1176_v11  ;;  %v1255_v16 = vsel %vm1223_vm9, %v1173_v5, %v1239_v10 }
 0x259   : > { %v1258_v15 = vsel %vm1226_vm10, %v1184_v8, %v1242_v12 }
 0x25a   : > { %v1270_v17 = vpack.c.bf16 %v1258_v15, %v1257_v14  ;;  %v1256_v18 = vsel %vm1224_vm11, %v1176_v11, %v1240_v13  ;;  %v2596_v19 = vpop.f32.mrb[24].mxu0 }
 0x25b   : > { %v1269_v20 = vpack.c.bf16 %v1256_v18, %v1255_v16  ;;  %v1197_v21 = vadd.f32 %v2596_v19, %v3082_v43  ;;  %v1188_v22 = vpop.f32.mrb[25].mxu0 }
 0x25c   : > { %v1189_v23 = vadd.f32 %v3082_v43, %v1188_v22  ;;  %v2597_v24 = vpop.f32.mrb[26].mxu0 }
 0x25d   : > { %v1245_v25 = vmul.f32 0.01, %v1197_v21  ;;  %v1200_v26 = vadd.f32 %v2597_v24, %v3082_v43  ;;  %v1191_v27 = vpop.f32.mrb[27].mxu0  ;;  %2614 = vmatprep.mubr.msk.bf16.mxu1 %vm913_vm5, %v1269_v20  ;;  %vm1229_vm12 = vcmp.gt.f32.partialorder %v1197_v21, 0.0 }
 0x25e   : > { %v1243_v28 = vmul.f32 0.01, %v1189_v23  ;;  %v1192_v29 = vadd.f32 %v3082_v43, %v1191_v27  ;;  %2615 = vmatmul.mubr.msk.bf16.gmra.mrb[20].mxu1 %vm913_vm5, %v1270_v17  ;;  %vm1227_vm13 = vcmp.gt.f32.partialorder %v1189_v23, 0.0 }
 0x25f   : > { %vm1230_vm14 = vcmp.gt.f32.partialorder %v1200_v26, 0.0  ;;  %v1246_v30 = vmul.f32 0.01, %v1200_v26  ;;  %v1261_v32 = vsel %vm1229_vm12, %v1197_v21, %v1245_v25 }
 0x260   : > { %vm1228_vm15 = vcmp.gt.f32.partialorder %v1192_v29, 0.0  ;;  %v1244_v31 = vmul.f32 0.01, %v1192_v29  ;;  %v1259_v34 = vsel %vm1227_vm13, %v1189_v23, %v1243_v28 }
 0x261   : > { %v1262_v33 = vsel %vm1230_vm14, %v1200_v26, %v1246_v30 }
 0x262   : > { %v1272_v35 = vpack.c.bf16 %v1262_v33, %v1261_v32  ;;  %v1260_v36 = vsel %vm1228_vm15, %v1192_v29, %v1244_v31  ;;  %v2600_v37 = vpop.f32.mrb[28].mxu0 }
 0x263   : > { %v1271_v38 = vpack.c.bf16 %v1260_v36, %v1259_v34  ;;  %v1213_v39 = vadd.f32 %v2600_v37, %v3082_v43  ;;  %v1204_v40 = vpop.f32.mrb[29].mxu0 }
 0x264   : > { %v1205_v41 = vadd.f32 %v3082_v43, %v1204_v40  ;;  %v2601_v46 = vpop.f32.mrb[30].mxu0 }
 0x265   : > { %v1249_v47 = vmul.f32 0.01, %v1213_v39  ;;  %v1216_v42 = vadd.f32 %v2601_v46, %v3082_v43  ;;  %v1207_v44 = vpop.f32.mrb[31].mxu0  ;;  %2618 = vmatprep.mubr.msk.bf16.mxu1 %vm913_vm5, %v1271_v38  ;;  %vm1233_vm1 = vcmp.gt.f32.partialorder %v1213_v39, 0.0 }
 0x266   : > { %v1247_v45 = vmul.f32 0.01, %v1205_v41  ;;  %v1208_v48 = vadd.f32 %v3082_v43, %v1207_v44  ;;  %2619 = vmatmul.mubr.msk.bf16.gmra.mrb[24].mxu1 %vm913_vm5, %v1272_v35  ;;  %vm1231_vm2 = vcmp.gt.f32.partialorder %v1205_v41, 0.0  ;;  %v1579_v43 = vld [vmem:[%s3506_s10] sm:$0xff] }
 0x267   : > { %vm1234_vm3 = vcmp.gt.f32.partialorder %v1216_v42, 0.0  ;;  %v1250_v49 = vmul.f32 0.01, %v1216_v42  ;;  %v1265_v52 = vsel %vm1233_vm1, %v1213_v39, %v1249_v47  ;;  %v2682_v61 = vpack.c.bf16 %v1580_v59, %v1579_v43 }
 0x268   : > { %vm1232_vm4 = vcmp.gt.f32.partialorder %v1208_v48, 0.0  ;;  %v1248_v51 = vmul.f32 0.01, %v1208_v48  ;;  %v1263_v54 = vsel %vm1231_vm2, %v1205_v41, %v1247_v45 }
 0x269   : > { %v1266_v53 = vsel %vm1234_vm3, %v1216_v42, %v1250_v49  ;;  %2683 = vmatprep.subr.bf16.mxu0 %v2682_v61 }
 0x26a   : > { %v1274_v55 = vpack.c.bf16 %v1266_v53, %v1265_v52  ;;  %v1264_v57 = vsel %vm1232_vm4, %v1208_v48, %v1248_v51  ;;  %2685 = vmatpush3.bf16.msra.mxu0 %v2682_v61 }
 0x26b   : > { %v1273_v58 = vpack.c.bf16 %v1264_v57, %v1263_v54  ;;  %2687 = vmatprep.subr.bf16.mxu0 %v2686_v63 }
 0x26d   : > { %2622 = vmatprep.mubr.msk.bf16.mxu1 %vm913_vm5, %v1273_v58 }
 0x26e   : > { %2623 = vmatmul.mubr.msk.bf16.gmra.mrb[28].mxu1 %vm913_vm5, %v1274_v55  ;;  %2689 = vmatpush3.bf16.msra.mxu0 %v2686_v63 }
 0x329   : > { %v2612_v1 = vpop.f32.mrb[16].mxu1 }
 0x32a   : > { %v1372_v2 = vpop.f32.mrb[17].mxu1  ;;  %v1381_v3 = vadd.f32 %v2612_v1, %v3123_v0 }
 0x32b   : > { %v1373_v4 = vadd.f32 %v3123_v0, %v1372_v2  ;;  %v2613_v5 = vpop.f32.mrb[18].mxu1 }
 0x32c   : > { %v1384_v6 = vadd.f32 %v2613_v5, %v3123_v0  ;;  %v1375_v7 = vpop.f32.mrb[19].mxu1  ;;  %v1453_v10 = vmul.f32 0.01, %v1381_v3  ;;  %vm1437_vm7 = vcmp.gt.f32.partialorder %v1381_v3, 0.0 }
 0x32d   : > { %v1451_v8 = vmul.f32 0.01, %v1373_v4  ;;  %v1376_v9 = vadd.f32 %v3123_v0, %v1375_v7  ;;  %vm1435_vm5 = vcmp.gt.f32.partialorder %v1373_v4, 0.0 }
 0x32e   : > { %v1454_v13 = vmul.f32 0.01, %v1384_v6  ;;  %vm1438_vm8 = vcmp.gt.f32.partialorder %v1384_v6, 0.0  ;;  %v3139_v20 = vsel %vm1437_vm7, %v1381_v3, %v1453_v10 }
 0x32f   : > { %v1452_v11 = vmul.f32 0.01, %v1376_v9  ;;  %v3129_v12 = vsel %vm1435_vm5, %v1373_v4, %v1451_v8  ;;  %vm1436_vm6 = vcmp.gt.f32.partialorder %v1376_v9, 0.0 }
 0x330   : > { %1499 = vrot.lane.b32.xlu0 %v3129_v12, %s2826_s22  ;;  %v3143_v22 = vsel %vm1438_vm8, %v1384_v6, %v1454_v13 }
 0x331   : > { %v2616_v14 = vpop.f32.mrb[20].mxu1  ;;  %v3133_v15 = vsel %vm1436_vm6, %v1376_v9, %v1452_v11 }
 0x332   : > { %v1388_v16 = vpop.f32.mrb[21].mxu1  ;;  %1501 = vrot.lane.b32.xlu1 %v3133_v15, %s2826_s22  ;;  %v1397_v17 = vadd.f32 %v2616_v14, %v3123_v0 }
 0x333   : > { %v1389_v18 = vadd.f32 %v3123_v0, %v1388_v16  ;;  %v2617_v19 = vpop.f32.mrb[22].mxu1 }
 0x334   : > { %v1391_v21 = vpop.f32.mrb[23].mxu1  ;;  %1503 = vrot.lane.b32.xlu0 %v3139_v20, %s2826_s22  ;;  %v1400_v24 = vadd.f32 %v2617_v19, %v3123_v0  ;;  %v1457_v26 = vmul.f32 0.01, %v1397_v17  ;;  %vm1441_vm11 = vcmp.gt.f32.partialorder %v1397_v17, 0.0 }
 0x335   : > { %v1455_v23 = vmul.f32 0.01, %v1389_v18  ;;  %v1392_v25 = vadd.f32 %v3123_v0, %v1391_v21  ;;  %vm1439_vm9 = vcmp.gt.f32.partialorder %v1389_v18, 0.0 }
 0x336   : > { %1505 = vrot.lane.b32.xlu1 %v3143_v22, %s2826_s22  ;;  %v1458_v29 = vmul.f32 0.01, %v1400_v24  ;;  %vm1442_vm12 = vcmp.gt.f32.partialorder %v1400_v24, 0.0  ;;  %v3159_v36 = vsel %vm1441_vm11, %v1397_v17, %v1457_v26 }
 0x337   : > { %v1456_v27 = vmul.f32 0.01, %v1392_v25  ;;  %v3149_v28 = vsel %vm1439_vm9, %v1389_v18, %v1455_v23  ;;  %vm1440_vm10 = vcmp.gt.f32.partialorder %v1392_v25, 0.0 }
 0x338   : > { %1507 = vrot.lane.b32.xlu0 %v3149_v28, %s2826_s22  ;;  %v3165_v41 = vsel %vm1442_vm12, %v1400_v24, %v1458_v29 }
 0x339   : > { %v2620_v30 = vpop.f32.mrb[24].mxu1  ;;  %v3153_v31 = vsel %vm1440_vm10, %v1392_v25, %v1456_v27 }
 0x33a   : > { %v1404_v32 = vpop.f32.mrb[25].mxu1  ;;  %1509 = vrot.lane.b32.xlu1 %v3153_v31, %s2826_s22  ;;  %v1413_v33 = vadd.f32 %v2620_v30, %v3123_v0 }
 0x33b   : > { %v1405_v34 = vadd.f32 %v3123_v0, %v1404_v32  ;;  %v2621_v35 = vpop.f32.mrb[26].mxu1 }
 0x33c   : > { %v1416_v37 = vadd.f32 %v2621_v35, %v3123_v0  ;;  %v1407_v38 = vpop.f32.mrb[27].mxu1  ;;  %1511 = vrot.lane.b32.xlu0 %v3159_v36, %s2826_s22  ;;  %v1461_v46 = vmul.f32 0.01, %v1413_v33  ;;  %vm1445_vm15 = vcmp.gt.f32.partialorder %v1413_v33, 0.0 }
 0x33d   : > { %v1459_v39 = vmul.f32 0.01, %v1405_v34  ;;  %v1408_v40 = vadd.f32 %v3123_v0, %v1407_v38  ;;  %vm1443_vm13 = vcmp.gt.f32.partialorder %v1405_v34, 0.0 }
 0x33e   : > { %1513 = vrot.lane.b32.xlu1 %v3165_v41, %s2826_s22  ;;  %v1462_v44 = vmul.f32 0.01, %v1416_v37  ;;  %vm1446_vm1 = vcmp.gt.f32.partialorder %v1416_v37, 0.0  ;;  %v3179_v54 = vsel %vm1445_vm15, %v1413_v33, %v1461_v46 }
 0x33f   : > { %v1460_v47 = vmul.f32 0.01, %v1408_v40  ;;  %v3169_v42 = vsel %vm1443_vm13, %v1405_v34, %v1459_v39  ;;  %vm1444_vm14 = vcmp.gt.f32.partialorder %v1408_v40, 0.0 }
 0x340   : > { %1515 = vrot.lane.b32.xlu0 %v3169_v42, %s2826_s22  ;;  %v3183_v57 = vsel %vm1446_vm1, %v1416_v37, %v1462_v44 }
 0x341   : > { %v2624_v45 = vpop.f32.mrb[28].mxu1  ;;  %v3173_v48 = vsel %vm1444_vm14, %v1408_v40, %v1460_v47  ;;  %v2042_v47 = vshrl.u32 %v759_v50, 7  ;;  %v2436_v50 = vld [vmem:[%s545_s17] ss:$0 sm:$0xff] }
 0x342   : > { %1517 = vrot.lane.b32.xlu1 %v3173_v48, %s2826_s22  ;;  %v1420_v49 = vpop.f32.mrb[29].mxu1  ;;  %v1429_v51 = vadd.f32 %v2624_v45, %v3123_v0 }
 0x343   : > { %v1421_v52 = vadd.f32 %v3123_v0, %v1420_v49  ;;  %v2625_v53 = vpop.f32.mrb[30].mxu1  ;;  %v2044_v44 = vadd.s32 16, %v2042_v47  ;;  %v2045_v45 = vadd.s32 24, %v2042_v47  ;;  %v2047_v49 = vadd.s32 40, %v2042_v47 }
 0x344   : > { %1519 = vrot.lane.b32.xlu0 %v3179_v54, %s2826_s22  ;;  %v1423_v55 = vpop.f32.mrb[31].mxu1  ;;  %v1432_v43 = vadd.f32 %v2625_v53, %v3123_v0  ;;  %v1465_v60 = vmul.f32 0.01, %v1429_v51  ;;  %vm1449_vm4 = vcmp.gt.f32.partialorder %v1429_v51, 0.0  ;;  %vm2055_vm6 = vcmp.eq.s32.totalorder %v2042_v47, %v2436_v50 }
 0x345   : > { %v1463_v58 = vmul.f32 0.01, %v1421_v52  ;;  %v1424_v59 = vadd.f32 %v3123_v0, %v1423_v55  ;;  %vm1447_vm2 = vcmp.gt.f32.partialorder %v1421_v52, 0.0  ;;  %vm2057_vm8 = vcmp.eq.s32.totalorder %v2044_v44, %v2436_v50 }
 0x346   : > { %1521 = vrot.lane.b32.xlu1 %v3183_v57, %s2826_s22  ;;  %v1466_v63 = vmul.f32 0.01, %v1432_v43  ;;  %vm1450_vm5 = vcmp.gt.f32.partialorder %v1432_v43, 0.0  ;;  %v3197_v0 = vsel %vm1449_vm4, %v1429_v51, %v1465_v60  ;;  %vm2058_vm9 = vcmp.eq.s32.totalorder %v2045_v45, %v2436_v50 }
 0x347   : > { %v1464_v61 = vmul.f32 0.01, %v1424_v59  ;;  %v3189_v62 = vsel %vm1447_vm2, %v1421_v52, %v1463_v58  ;;  %vm1448_vm3 = vcmp.gt.f32.partialorder %v1424_v59, 0.0  ;;  %vm2060_vm12 = vcmp.eq.s32.totalorder %v2047_v49, %v2436_v50  ;;  %vm2447_vm13 = vmpackc.low %vm2058_vm9, %vm2057_vm8 }
 0x348   : > { %1523 = vrot.lane.b32.xlu0 %v3189_v62, %s2826_s22  ;;  %v3201_v2 = vsel %vm1450_vm5, %v1432_v43, %v1466_v63  ;;  %v2048_v51 = vadd.s32 48, %v2042_v47  ;;  %v2049_v52 = vadd.s32 56, %v2042_v47  ;;  %v2827_v53 = vmov 1.0|1.0  }
 0x349   : > { %v3193_v1 = vsel %vm1448_vm3, %v1424_v59, %v1464_v61  ;;  %vm1943_vm3 = vcmask 7168  }
 0x34a   : > { %1525 = vrot.lane.b32.xlu1 %v3193_v1, %s2826_s22  ;;  %vm2061_vm15 = vcmp.eq.s32.totalorder %v2048_v51, %v2436_v50  ;;  %vm2062_vm1 = vcmp.eq.s32.totalorder %v2049_v52, %v2436_v50 }
 0x34b   : > { %vm2451_vm2 = vmpackc.low %vm2062_vm1, %vm2061_vm15 }
 0x34c   : > { %1527 = vrot.lane.b32.xlu0 %v3197_v0, %s2826_s22 }
 0x34e   : > { %1529 = vrot.lane.b32.xlu1 %v3201_v2, %s2826_s22 }
 0x3a2   : > { %v1500_v3 = vpop.permute.xlu0 %1499 }
 0x3a3   : > { %v1547_v4 = vadd.f32 %v1500_v3, %v3129_v12 }
 0x3a4   : > { %v1502_v5 = vpop.permute.xlu1 %1501 }
 0x3a5   : > { %1563 = vst.msk [vmem:[%s3209_s26] sm:$0xff] %vm581_vm0, %v1547_v4  ;;  %v1548_v6 = vadd.f32 %v1502_v5, %v3133_v15  ;;  %2634 = vmatprep.mubr.msk.f32.mxu0 %vm581_vm0, %v1547_v4 }
 0x3a6   : > { %v1504_v7 = vpop.permute.xlu0 %1503 }
 0x3a7   : > { %1564 = vst.msk [vmem:[%s3209_s26 + $0x8] sm:$0xff] %vm581_vm0, %v1548_v6  ;;  %v1549_v8 = vadd.f32 %v1504_v7, %v3139_v20  ;;  %2635 = vmatmul.mubr.msk.f32.vlgmr.msra.gmra.mrb[32].mxu0 %vm581_vm0, %v1548_v6  ;;  %v2091_v9 = vpack.c.bf16 %v1548_v6, %v1547_v4 }
 0x3a8   : > { %v1506_v10 = vpop.permute.xlu1 %1505 }
 0x3a9   : > { %1565 = vst.msk [vmem:[%s3209_s26 + $0x10] sm:$0xff] %vm581_vm0, %v1549_v8  ;;  %v1550_v11 = vadd.f32 %v1506_v10, %v3143_v22  ;;  %2637 = vmatprep.mubr.msk.f32.mxu0 %vm581_vm0, %v1549_v8  ;;  %2658 = vmatprep.subr.bf16.mxu1 %v2091_v9 }
 0x3aa   : > { %2659 = vmatpush3.bf16.msra.mxu1 %v2091_v9  ;;  %v1508_v12 = vpop.permute.xlu0 %1507 }
 0x3ab   : > { %1566 = vst.msk [vmem:[%s3209_s26 + $0x18] sm:$0xff] %vm581_vm0, %v1550_v11  ;;  %v1551_v13 = vadd.f32 %v1508_v12, %v3149_v28  ;;  %2638 = vmatmul.mubr.msk.f32.gmra.mrb[34].mxu0 %vm581_vm0, %v1550_v11  ;;  %v2092_v14 = vpack.c.bf16 %v1550_v11, %v1549_v8 }
 0x3ac   : > { %v1510_v15 = vpop.permute.xlu1 %1509 }
 0x3ad   : > { %1567 = vst.msk [vmem:[%s3209_s26 + $0x20] sm:$0xff] %vm581_vm0, %v1551_v13  ;;  %v1552_v16 = vadd.f32 %v1510_v15, %v3153_v31  ;;  %2640 = vmatprep.mubr.msk.f32.mxu0 %vm581_vm0, %v1551_v13  ;;  %2660 = vmatprep.subr.bf16.mxu1 %v2092_v14 }
 0x3ae   : > { %2661 = vmatpush3.bf16.msra.mxu1 %v2092_v14  ;;  %v1512_v17 = vpop.permute.xlu0 %1511 }
 0x3af   : > { %1568 = vst.msk [vmem:[%s3209_s26 + $0x28] sm:$0xff] %vm581_vm0, %v1552_v16  ;;  %v1553_v18 = vadd.f32 %v1512_v17, %v3159_v36  ;;  %2641 = vmatmul.mubr.msk.f32.gmra.mrb[36].mxu0 %vm581_vm0, %v1552_v16  ;;  %v2093_v19 = vpack.c.bf16 %v1552_v16, %v1551_v13 }
 0x3b0   : > { %v1514_v20 = vpop.permute.xlu1 %1513 }
 0x3b1   : > { %1569 = vst.msk [vmem:[%s3209_s26 + $0x30] sm:$0xff] %vm581_vm0, %v1553_v18  ;;  %v1554_v21 = vadd.f32 %v1514_v20, %v3165_v41  ;;  %2643 = vmatprep.mubr.msk.f32.mxu0 %vm581_vm0, %v1553_v18  ;;  %2662 = vmatprep.subr.bf16.mxu1 %v2093_v19 }
 0x3b2   : > { %2663 = vmatpush3.bf16.msra.mxu1 %v2093_v19  ;;  %v1516_v22 = vpop.permute.xlu0 %1515 }
 0x3b3   : > { %1570 = vst.msk [vmem:[%s3209_s26 + $0x38] sm:$0xff] %vm581_vm0, %v1554_v21  ;;  %v1555_v23 = vadd.f32 %v1516_v22, %v3169_v42  ;;  %2644 = vmatmul.mubr.msk.f32.gmra.mrb[38].mxu0 %vm581_vm0, %v1554_v21  ;;  %v2094_v24 = vpack.c.bf16 %v1554_v21, %v1553_v18  ;;  %v2043_v42 = vadd.s32 8, %v2042_v47 }
 0x3b4   : > { %v1518_v25 = vpop.permute.xlu1 %1517 }
 0x3b5   : > { %1571 = vst.msk [vmem:[%s3209_s26 + $0x40] sm:$0xff] %vm581_vm0, %v1555_v23  ;;  %v1556_v26 = vadd.f32 %v1518_v25, %v3173_v48  ;;  %2646 = vmatprep.mubr.msk.f32.mxu0 %vm581_vm0, %v1555_v23  ;;  %2664 = vmatprep.subr.bf16.mxu1 %v2094_v24  ;;  %v2046_v48 = vadd.s32 32, %v2042_v47  ;;  %vm2056_vm7 = vcmp.eq.s32.totalorder %v2043_v42, %v2436_v50 }
 0x3b6   : > { %2665 = vmatpush3.bf16.msra.mxu1 %v2094_v24  ;;  %v1520_v27 = vpop.permute.xlu0 %1519  ;;  %vm2445_vm10 = vmpackc.low %vm2056_vm7, %vm2055_vm6 }
 0x3b7   : > { %1572 = vst.msk [vmem:[%s3209_s26 + $0x48] sm:$0xff] %vm581_vm0, %v1556_v26  ;;  %v1557_v28 = vadd.f32 %v1520_v27, %v3179_v54  ;;  %2647 = vmatmul.mubr.msk.f32.gmra.mrb[40].mxu0 %vm581_vm0, %v1556_v26  ;;  %v2095_v29 = vpack.c.bf16 %v1556_v26, %v1555_v23  ;;  %vm2059_vm11 = vcmp.eq.s32.totalorder %v2046_v48, %v2436_v50 }
 0x3b8   : > { %v1522_v30 = vpop.permute.xlu1 %1521  ;;  %2674 = vmatprep.mubr.msk.bf16.mxu1 %vm2445_vm10, %v2827_v53  ;;  %vm2449_vm14 = vmpackc.low %vm2060_vm12, %vm2059_vm11 }
 0x3b9   : > { %1573 = vst.msk [vmem:[%s3209_s26 + $0x50] sm:$0xff] %vm581_vm0, %v1557_v28  ;;  %v1558_v31 = vadd.f32 %v1522_v30, %v3183_v57  ;;  %2649 = vmatprep.mubr.msk.f32.mxu0 %vm581_vm0, %v1557_v28  ;;  %2666 = vmatprep.subr.bf16.mxu1 %v2095_v29 }
 0x3ba   : > { %2667 = vmatpush3.bf16.msra.mxu1 %v2095_v29  ;;  %v1524_v32 = vpop.permute.xlu0 %1523 }
 0x3bb   : > { %1574 = vst.msk [vmem:[%s3209_s26 + $0x58] sm:$0xff] %vm581_vm0, %v1558_v31  ;;  %v1559_v33 = vadd.f32 %v1524_v32, %v3189_v62  ;;  %2650 = vmatmul.mubr.msk.f32.gmra.mrb[42].mxu0 %vm581_vm0, %v1558_v31  ;;  %v2096_v34 = vpack.c.bf16 %v1558_v31, %v1557_v28 }
 0x3bc   : > { %v1526_v35 = vpop.permute.xlu1 %1525 }
 0x3bd   : > { %1575 = vst.msk [vmem:[%s3209_s26 + $0x60] sm:$0xff] %vm581_vm0, %v1559_v33  ;;  %v1560_v36 = vadd.f32 %v1526_v35, %v3193_v1  ;;  %2652 = vmatprep.mubr.msk.f32.mxu0 %vm581_vm0, %v1559_v33  ;;  %2668 = vmatprep.subr.bf16.mxu1 %v2096_v34 }
 0x3be   : > { %2669 = vmatpush3.bf16.msra.mxu1 %v2096_v34  ;;  %v1528_v37 = vpop.permute.xlu0 %1527 }
 0x3bf   : > { %1576 = vst.msk [vmem:[%s3209_s26 + $0x68] sm:$0xff] %vm581_vm0, %v1560_v36  ;;  %v1561_v38 = vadd.f32 %v1528_v37, %v3197_v0  ;;  %2653 = vmatmul.mubr.msk.f32.gmra.mrb[44].mxu0 %vm581_vm0, %v1560_v36  ;;  %v2097_v39 = vpack.c.bf16 %v1560_v36, %v1559_v33 }
 0x3c0   : > { %v1530_v40 = vpop.permute.xlu1 %1529 }
 0x3c1   : > { %1577 = vst.msk [vmem:[%s3209_s26 + $0x70] sm:$0xff] %vm581_vm0, %v1561_v38  ;;  %v1562_v41 = vadd.f32 %v1530_v40, %v3201_v2  ;;  %2655 = vmatprep.mubr.msk.f32.mxu0 %vm581_vm0, %v1561_v38  ;;  %2670 = vmatprep.subr.bf16.mxu1 %v2097_v39 }
 0x3c2   : > { %2671 = vmatpush3.bf16.msra.mxu1 %v2097_v39 }
 0x3c3   : > { %1578 = vst.msk [vmem:[%s3209_s26 + $0x78] sm:$0xff] %vm581_vm0, %v1562_v41  ;;  %2656 = vmatmul.mubr.msk.f32.gmra.mrb[46].mxu0 %vm581_vm0, %v1562_v41  ;;  %v2098_v46 = vpack.c.bf16 %v1562_v41, %v1561_v38 }
 0x3c5   : > { %2672 = vmatprep.subr.bf16.mxu1 %v2098_v46 }
 0x3c6   : > { %2673 = vmatpush3.bf16.msra.mxu1 %v2098_v46 }
 0x3c9   : > { %2675 = vmatmul.mubr.msk.bf16.vlgmr.msra.gmra.mrb[32].mxu1 %vm2447_vm13, %v2827_v53 }
 0x3ca   : > { %2678 = vmatprep.mubr.msk.bf16.mxu1 %vm2449_vm14, %v2827_v53 }
 0x3d1   : > { %2679 = vmatmul.mubr.msk.bf16.gmra.mrb[36].mxu1 %vm2451_vm2, %v2827_v53 }
 0x47a   : > { %v2636_v54 = vpop.f32.mrb[32].mxu0 }
 0x47b   : > { %v1710_v55 = vadd.f32 %v2636_v54, %v2419_v56  ;;  %v1704_v57 = vpop.f32.mrb[33].mxu0 }
 0x47c   : > { %v1705_v58 = vadd.f32 %v2419_v56, %v1704_v57 }
 0x47d   : > { %1801 = vrot.lane.b32.xlu1 %v1710_v55, %s2828_s23 }
 0x47e   : > { %v2639_v43 = vpop.f32.mrb[34].mxu0  ;;  %1799 = vrot.lane.b32.xlu0 %v1705_v58, %s2828_s23 }
 0x47f   : > { %v1720_v59 = vadd.f32 %v2639_v43, %v2419_v56  ;;  %v1714_v60 = vpop.f32.mrb[35].mxu0  ;;  %v2083_v43 = vld [vmem:[%s3284_s21] sm:$0xff] }
 0x480   : > { %v1715_v61 = vadd.f32 %v2419_v56, %v1714_v60 }
 0x481   : > { %1805 = vrot.lane.b32.xlu1 %v1720_v59, %s2828_s23 }
 0x482   : > { %v2642_v62 = vpop.f32.mrb[36].mxu0  ;;  %1803 = vrot.lane.b32.xlu0 %v1715_v61, %s2828_s23 }
 0x483   : > { %v1730_v63 = vadd.f32 %v2642_v62, %v2419_v56  ;;  %v1724_v1 = vpop.f32.mrb[37].mxu0 }
 0x484   : > { %v1725_v0 = vadd.f32 %v2419_v56, %v1724_v1  ;;  %v2084_v1 = vld [vmem:[%s3284_s21 + $0x8] sm:$0xff] }
 0x485   : > { %1809 = vrot.lane.b32.xlu1 %v1730_v63, %s2828_s23 }
 0x486   : > { %v2645_v2 = vpop.f32.mrb[38].mxu0  ;;  %1807 = vrot.lane.b32.xlu0 %v1725_v0, %s2828_s23 }
 0x487   : > { %v1740_v3 = vadd.f32 %v2645_v2, %v2419_v56  ;;  %v1734_v4 = vpop.f32.mrb[39].mxu0 }
 0x488   : > { %v1735_v5 = vadd.f32 %v2419_v56, %v1734_v4 }
 0x489   : > { %1813 = vrot.lane.b32.xlu1 %v1740_v3, %s2828_s23 }
 0x48a   : > { %v2648_v6 = vpop.f32.mrb[40].mxu0  ;;  %1811 = vrot.lane.b32.xlu0 %v1735_v5, %s2828_s23 }
 0x48b   : > { %v1750_v7 = vadd.f32 %v2648_v6, %v2419_v56  ;;  %v1744_v8 = vpop.f32.mrb[41].mxu0  ;;  %v2087_v6 = vld [vmem:[%s3284_s21 + $0x20] sm:$0xff] }
 0x48c   : > { %v1745_v9 = vadd.f32 %v2419_v56, %v1744_v8 }
 0x48d   : > { %1817 = vrot.lane.b32.xlu1 %v1750_v7, %s2828_s23 }
 0x48e   : > { %v2651_v10 = vpop.f32.mrb[42].mxu0  ;;  %1815 = vrot.lane.b32.xlu0 %v1745_v9, %s2828_s23 }
 0x48f   : > { %v1760_v11 = vadd.f32 %v2651_v10, %v2419_v56  ;;  %v1754_v12 = vpop.f32.mrb[43].mxu0 }
 0x490   : > { %v1755_v13 = vadd.f32 %v2419_v56, %v1754_v12  ;;  %v2088_v12 = vld [vmem:[%s3284_s21 + $0x28] sm:$0xff] }
 0x491   : > { %1821 = vrot.lane.b32.xlu1 %v1760_v11, %s2828_s23 }
 0x492   : > { %1819 = vrot.lane.b32.xlu0 %v1755_v13, %s2828_s23  ;;  %v2654_v14 = vpop.f32.mrb[44].mxu0 }
 0x493   : > { %v1770_v15 = vadd.f32 %v2654_v14, %v2419_v56  ;;  %v1764_v16 = vpop.f32.mrb[45].mxu0 }
 0x494   : > { %v1765_v17 = vadd.f32 %v2419_v56, %v1764_v16 }
 0x495   : > { %1825 = vrot.lane.b32.xlu1 %v1770_v15, %s2828_s23 }
 0x496   : > { %1823 = vrot.lane.b32.xlu0 %v1765_v17, %s2828_s23  ;;  %v2657_v18 = vpop.f32.mrb[46].mxu0 }
 0x497   : > { %v1780_v19 = vadd.f32 %v2657_v18, %v2419_v56  ;;  %v1774_v20 = vpop.f32.mrb[47].mxu0 }
 0x498   : > { %v1775_v21 = vadd.f32 %v2419_v56, %v1774_v20 }
 0x499   : > { %1829 = vrot.lane.b32.xlu1 %v1780_v19, %s2828_s23 }
 0x49a   : > { %1827 = vrot.lane.b32.xlu0 %v1775_v21, %s2828_s23 }
 0x49c   : > { %v2676_v54 = vpop.f32.mrb[32].mxu1 }
 0x4ef   : > { %v1802_v22 = vpop.permute.xlu1 %1801 }
 0x4f0   : > { %v3329_v23 = vsub.f32 %v1710_v55, %v1802_v22  ;;  %v1800_v24 = vpop.permute.xlu0 %1799  ;;  %v2133_v55 = vpop.f32.mrb[33].mxu1 }
 0x4f1   : > { %v3331_v25 = vsub.f32 %v1705_v58, %v1800_v24  ;;  %v2677_v57 = vpop.f32.mrb[34].mxu1  ;;  %v2085_v58 = vld [vmem:[%s3284_s21 + $0x10] sm:$0xff]  ;;  %v2164_v62 = vadd.f32 %v2133_v55, %v2083_v43 }
 0x4f2   : > { %1897 = vrot.lane.b32.xlu1 %v3329_v23, %s2829_s25  ;;  %v2136_v60 = vpop.f32.mrb[35].mxu1  ;;  %v1864_v14 = vsub.f32 0.0, %v3329_v23 }
 0x4f3   : > { %v1806_v26 = vpop.permute.xlu1 %1805  ;;  %1895 = vrot.lane.b32.xlu0 %v3331_v25, %s2829_s25  ;;  %2172 = vst.msk [vmem:[%s3284_s21] sm:$0xff] %vm581_vm0, %v2164_v62  ;;  %v2680_v2 = vpop.f32.mrb[36].mxu1 }
 0x4f4   : > { %v3337_v27 = vsub.f32 %v1720_v59, %v1806_v26  ;;  %v1804_v28 = vpop.permute.xlu0 %1803  ;;  %v2086_v59 = vld [vmem:[%s3284_s21 + $0x18] sm:$0xff] }
 0x4f5   : > { %v3339_v29 = vsub.f32 %v1715_v61, %v1804_v28  ;;  %v2166_v61 = vadd.f32 %v2676_v54, %v2085_v58 }
 0x4f6   : > { %1901 = vrot.lane.b32.xlu1 %v3337_v27, %s2829_s25 }
 0x4f7   : > { %v1810_v30 = vpop.permute.xlu1 %1809  ;;  %1899 = vrot.lane.b32.xlu0 %v3339_v29, %s2829_s25  ;;  %2174 = vst.msk [vmem:[%s3284_s21 + $0x10] sm:$0xff] %vm581_vm0, %v2166_v61  ;;  %v1865_v24 = vsub.f32 0.0, %v3339_v29 }
 0x4f8   : > { %v3345_v31 = vsub.f32 %v1730_v63, %v1810_v30  ;;  %v1808_v32 = vpop.permute.xlu0 %1807  ;;  %v2167_v63 = vadd.f32 %v2677_v57, %v2086_v59 }
 0x4f9   : > { %v3347_v33 = vsub.f32 %v1725_v0, %v1808_v32  ;;  %v2165_v0 = vadd.f32 %v2136_v60, %v2084_v1 }
 0x4fa   : > { %1905 = vrot.lane.b32.xlu1 %v3345_v31, %s2829_s25  ;;  %2175 = vst.msk [vmem:[%s3284_s21 + $0x18] sm:$0xff] %vm581_vm0, %v2167_v63  ;;  %v1868_v32 = vsub.f32 0.0, %v3345_v31 }
 0x4fb   : > { %v1814_v34 = vpop.permute.xlu1 %1813  ;;  %1903 = vrot.lane.b32.xlu0 %v3347_v33, %s2829_s25  ;;  %2173 = vst.msk [vmem:[%s3284_s21 + $0x8] sm:$0xff] %vm581_vm0, %v2165_v0 }
 0x4fc   : > { %v3353_v35 = vsub.f32 %v1740_v3, %v1814_v34  ;;  %v1812_v36 = vpop.permute.xlu0 %1811  ;;  %v2149_v3 = vpop.f32.mrb[37].mxu1 }
 0x4fd   : > { %v3355_v37 = vsub.f32 %v1735_v5, %v1812_v36  ;;  %v2681_v4 = vpop.f32.mrb[38].mxu1  ;;  %v2089_v5 = vld [vmem:[%s3284_s21 + $0x30] sm:$0xff]  ;;  %v2168_v10 = vadd.f32 %v2149_v3, %v2087_v6  ;;  %v1867_v36 = vsub.f32 0.0, %v3347_v33 }
 0x4fe   : > { %1909 = vrot.lane.b32.xlu1 %v3353_v35, %s2829_s25  ;;  %v2152_v8 = vpop.f32.mrb[39].mxu1 }
 0x4ff   : > { %v1818_v38 = vpop.permute.xlu1 %1817  ;;  %1907 = vrot.lane.b32.xlu0 %v3355_v37, %s2829_s25  ;;  %2176 = vst.msk [vmem:[%s3284_s21 + $0x20] sm:$0xff] %vm581_vm0, %v2168_v10 }
 0x500   : > { %v3361_v39 = vsub.f32 %v1750_v7, %v1818_v38  ;;  %v1816_v40 = vpop.permute.xlu0 %1815  ;;  %v2090_v7 = vld [vmem:[%s3284_s21 + $0x38] sm:$0xff] }
 0x501   : > { %v3363_v41 = vsub.f32 %v1745_v9, %v1816_v40  ;;  %v2170_v9 = vadd.f32 %v2680_v2, %v2089_v5 }
 0x502   : > { %1913 = vrot.lane.b32.xlu1 %v3361_v39, %s2829_s25  ;;  %v1872_v58 = vsub.f32 0.0, %v3361_v39 }
 0x503   : > { %v1822_v46 = vpop.permute.xlu1 %1821  ;;  %1911 = vrot.lane.b32.xlu0 %v3363_v41, %s2829_s25  ;;  %2178 = vst.msk [vmem:[%s3284_s21 + $0x30] sm:$0xff] %vm581_vm0, %v2170_v9 }
 0x504   : > { %v3369_v47 = vsub.f32 %v1760_v11, %v1822_v46  ;;  %v1820_v42 = vpop.permute.xlu0 %1819  ;;  %v2171_v11 = vadd.f32 %v2681_v4, %v2090_v7 }
 0x505   : > { %v3371_v44 = vsub.f32 %v1755_v13, %v1820_v42  ;;  %v2169_v13 = vadd.f32 %v2152_v8, %v2088_v12  ;;  %v1870_v42 = vsub.f32 0.0, %v3353_v35  ;;  %v1871_v35 = vsub.f32 0.0, %v3363_v41 }
 0x506   : > { %1917 = vrot.lane.b32.xlu1 %v3369_v47, %s2829_s25  ;;  %2179 = vst.msk [vmem:[%s3284_s21 + $0x38] sm:$0xff] %vm581_vm0, %v2171_v11  ;;  %v1874_v3 = vsub.f32 0.0, %v3369_v47 }
 0x507   : > { %v1826_v45 = vpop.permute.xlu1 %1825  ;;  %1915 = vrot.lane.b32.xlu0 %v3371_v44, %s2829_s25  ;;  %2177 = vst.msk [vmem:[%s3284_s21 + $0x28] sm:$0xff] %vm581_vm0, %v2169_v13  ;;  %v1873_v41 = vsub.f32 0.0, %v3371_v44  ;;  %vm2024_vm0 = vcmask 15360  }
 0x508   : > { %v3377_v48 = vsub.f32 %v1770_v15, %v1826_v45  ;;  %v1824_v49 = vpop.permute.xlu0 %1823  ;;  %v1863_v15 = vsub.f32 0.0, %v3331_v25 }
 0x509   : > { %v3379_v50 = vsub.f32 %v1765_v17, %v1824_v49  ;;  %v1869_v49 = vsub.f32 0.0, %v3355_v37 }
 0x50a   : > { %1921 = vrot.lane.b32.xlu1 %v3377_v48, %s2829_s25  ;;  %v1876_v47 = vsub.f32 0.0, %v3377_v48 }
 0x50b   : > { %v1830_v51 = vpop.permute.xlu1 %1829  ;;  %1919 = vrot.lane.b32.xlu0 %v3379_v50, %s2829_s25  ;;  %v1875_v44 = vsub.f32 0.0, %v3379_v50 }
 0x50c   : > { %v3385_v52 = vsub.f32 %v1780_v19, %v1830_v51  ;;  %v1828_v53 = vpop.permute.xlu0 %1827 }
 0x50d   : > { %v3387_v56 = vsub.f32 %v1775_v21, %v1828_v53  ;;  %v1866_v21 = vsub.f32 0.0, %v3337_v27 }
 0x50e   : > { %1925 = vrot.lane.b32.xlu1 %v3385_v52, %s2829_s25 }
 0x50f   : > { %1923 = vrot.lane.b32.xlu0 %v3387_v56, %s2829_s25 }
 0x564   : > { %v1898_v16 = vpop.permute.xlu1 %1897 }
 0x565   : > { %v1945_v17 = vsel %vm1943_vm3, %v1864_v14, %v1898_v16  ;;  %v1896_v18 = vpop.permute.xlu0 %1895 }
 0x566   : > { %v1962_v19 = vmul.f32 1.442695, %v1945_v17  ;;  %v1944_v20 = vsel %vm1943_vm3, %v1863_v15, %v1896_v18 }
 0x567   : > { %v1960_v22 = vmul.f32 1.442695, %v1944_v20 }
 0x568   : > { %2736 = vpow2.f32 %v1962_v19  ;;  %v1902_v26 = vpop.permute.xlu1 %1901 }
 0x569   : > { %2738 = vpow2.f32 %v1960_v22  ;;  %v1947_v28 = vsel %vm1943_vm3, %v1866_v21, %v1902_v26  ;;  %v1900_v23 = vpop.permute.xlu0 %1899  ;;  %v1878_v21 = vsub.f32 0.0, %v3385_v52 }
 0x56a   : > { %v1966_v30 = vmul.f32 1.442695, %v1947_v28  ;;  %v1946_v25 = vsel %vm1943_vm3, %v1865_v24, %v1900_v23  ;;  %v1877_v28 = vsub.f32 0.0, %v3387_v56 }
 0x56b   : > { %v1964_v34 = vmul.f32 1.442695, %v1946_v25 }
 0x56c   : > { %2740 = vpow2.f32 %v1966_v30  ;;  %v1906_v38 = vpop.permute.xlu1 %1905 }
 0x56d   : > { %2742 = vpow2.f32 %v1964_v34  ;;  %v1949_v27 = vsel %vm1943_vm3, %v1868_v32, %v1906_v38  ;;  %v1904_v29 = vpop.permute.xlu0 %1903 }
 0x56e   : > { %v1970_v40 = vmul.f32 1.442695, %v1949_v27  ;;  %v1948_v46 = vsel %vm1943_vm3, %v1867_v36, %v1904_v29 }
 0x56f   : > { %v1968_v45 = vmul.f32 1.442695, %v1948_v46 }
 0x570   : > { %2744 = vpow2.f32 %v1970_v40  ;;  %v1910_v51 = vpop.permute.xlu1 %1909 }
 0x571   : > { %2746 = vpow2.f32 %v1968_v45  ;;  %v1951_v31 = vsel %vm1943_vm3, %v1870_v42, %v1910_v51  ;;  %v1908_v33 = vpop.permute.xlu0 %1907 }
 0x572   : > { %v2737_v53 = vpop.eup %2736  ;;  %v1974_v54 = vmul.f32 1.442695, %v1951_v31  ;;  %v1950_v55 = vsel %vm1943_vm3, %v1869_v49, %v1908_v33 }
 0x573   : > { %v2739_v57 = vpop.eup %2738  ;;  %v1993_v43 = vadd.f32 1.0, %v2737_v53  ;;  %v1972_v59 = vmul.f32 1.442695, %v1950_v55 }
 0x574   : > { %v1992_v60 = vadd.f32 1.0, %v2739_v57  ;;  %2748 = vpow2.f32 %v1974_v54  ;;  %v1914_v37 = vpop.permute.xlu1 %1913 }
 0x575   : > { %2750 = vrcp.f32 %v1993_v43  ;;  %v1953_v61 = vsel %vm1943_vm3, %v1872_v58, %v1914_v37  ;;  %v1912_v62 = vpop.permute.xlu0 %1911 }
 0x576   : > { %v2741_v63 = vpop.eup %2740  ;;  %2752 = vrcp.f32 %v1992_v60  ;;  %v1978_v1 = vmul.f32 1.442695, %v1953_v61  ;;  %v1952_v0 = vsel %vm1943_vm3, %v1871_v35, %v1912_v62 }
 0x577   : > { %v2743_v2 = vpop.eup %2742  ;;  %v1995_v39 = vadd.f32 1.0, %v2741_v63  ;;  %2754 = vpow2.f32 %v1972_v59  ;;  %v1976_v4 = vmul.f32 1.442695, %v1952_v0 }
 0x578   : > { %v1994_v5 = vadd.f32 1.0, %v2743_v2  ;;  %2756 = vpow2.f32 %v1978_v1  ;;  %v1918_v6 = vpop.permute.xlu1 %1917 }
 0x579   : > { %2758 = vrcp.f32 %v1995_v39  ;;  %v1955_v7 = vsel %vm1943_vm3, %v1874_v3, %v1918_v6  ;;  %v1916_v8 = vpop.permute.xlu0 %1915 }
 0x57a   : > { %v2745_v9 = vpop.eup %2744  ;;  %2760 = vrcp.f32 %v1994_v5  ;;  %v1982_v10 = vmul.f32 1.442695, %v1955_v7  ;;  %v1954_v11 = vsel %vm1943_vm3, %v1873_v41, %v1916_v8 }
 0x57b   : > { %v2747_v12 = vpop.eup %2746  ;;  %v1997_v13 = vadd.f32 1.0, %v2745_v9  ;;  %2762 = vpow2.f32 %v1976_v4  ;;  %v1980_v14 = vmul.f32 1.442695, %v1954_v11 }
 0x57c   : > { %v1996_v15 = vadd.f32 1.0, %v2747_v12  ;;  %2764 = vpow2.f32 %v1982_v10  ;;  %v1922_v16 = vpop.permute.xlu1 %1921 }
 0x57d   : > { %2766 = vrcp.f32 %v1997_v13  ;;  %v1957_v17 = vsel %vm1943_vm3, %v1876_v47, %v1922_v16  ;;  %v1920_v18 = vpop.permute.xlu0 %1919 }
 0x57e   : > { %v2749_v48 = vpop.eup %2748  ;;  %2768 = vrcp.f32 %v1996_v15  ;;  %v1986_v19 = vmul.f32 1.442695, %v1957_v17  ;;  %v1956_v50 = vsel %vm1943_vm3, %v1875_v44, %v1920_v18 }
 0x57f   : > { %v2751_v20 = vpop.eup %2750  ;;  %v1999_v22 = vadd.f32 1.0, %v2749_v48  ;;  %2770 = vpow2.f32 %v1980_v14  ;;  %v1984_v24 = vmul.f32 1.442695, %v1956_v50 }
 0x580   : > { %v2753_v26 = vpop.eup %2752  ;;  %2026 = vst.msk [vmem:[%s3447_s18 + $0x8] sm:$0xff] %vm2024_vm0, %v2751_v20  ;;  %2772 = vpow2.f32 %v1986_v19  ;;  %v1926_v23 = vpop.permute.xlu1 %1925 }
 0x581   : > { %v2755_v30 = vpop.eup %2754  ;;  %2025 = vst.msk [vmem:[%s3447_s18] sm:$0xff] %vm2024_vm0, %v2753_v26  ;;  %2774 = vrcp.f32 %v1999_v22  ;;  %v1959_v25 = vsel %vm1943_vm3, %v1878_v21, %v1926_v23  ;;  %v1924_v32 = vpop.permute.xlu0 %1923 }
 0x582   : > { %v2757_v52 = vpop.eup %2756  ;;  %v1998_v34 = vadd.f32 1.0, %v2755_v30  ;;  %2776 = vpow2.f32 %v1984_v24  ;;  %v1990_v36 = vmul.f32 1.442695, %v1959_v25  ;;  %v1958_v38 = vsel %vm1943_vm3, %v1877_v28, %v1924_v32 }
 0x583   : > { %v2759_v56 = vpop.eup %2758  ;;  %v2001_v27 = vadd.f32 1.0, %v2757_v52  ;;  %v1988_v29 = vmul.f32 1.442695, %v1958_v38 }
 0x584   : > { %v2761_v40 = vpop.eup %2760  ;;  %2028 = vst.msk [vmem:[%s3447_s18 + $0x18] sm:$0xff] %vm2024_vm0, %v2759_v56  ;;  %2778 = vrcp.f32 %v1998_v34 }
 0x585   : > { %v2763_v46 = vpop.eup %2762  ;;  %2027 = vst.msk [vmem:[%s3447_s18 + $0x10] sm:$0xff] %vm2024_vm0, %v2761_v40  ;;  %2780 = vrcp.f32 %v2001_v27 }
 0x586   : > { %v2765_v42 = vpop.eup %2764  ;;  %v2000_v45 = vadd.f32 1.0, %v2763_v46  ;;  %2782 = vpow2.f32 %v1990_v36 }
 0x587   : > { %v2767_v49 = vpop.eup %2766  ;;  %v2003_v51 = vadd.f32 1.0, %v2765_v42  ;;  %2784 = vpow2.f32 %v1988_v29 }
 0x588   : > { %v2769_v31 = vpop.eup %2768  ;;  %2030 = vst.msk [vmem:[%s3447_s18 + $0x28] sm:$0xff] %vm2024_vm0, %v2767_v49  ;;  %2786 = vrcp.f32 %v2000_v45 }
 0x589   : > { %v2771_v33 = vpop.eup %2770  ;;  %2029 = vst.msk [vmem:[%s3447_s18 + $0x20] sm:$0xff] %vm2024_vm0, %v2769_v31  ;;  %2788 = vrcp.f32 %v2003_v51 }
 0x58a   : > { %v2773_v53 = vpop.eup %2772  ;;  %v2002_v54 = vadd.f32 1.0, %v2771_v33 }
 0x58b   : > { %v2775_v55 = vpop.eup %2774  ;;  %v2005_v57 = vadd.f32 1.0, %v2773_v53 }
 0x58c   : > { %v2777_v58 = vpop.eup %2776  ;;  %2032 = vst.msk [vmem:[%s3447_s18 + $0x38] sm:$0xff] %vm2024_vm0, %v2775_v55  ;;  %2790 = vrcp.f32 %v2002_v54 }
 0x58d   : > { %2792 = vrcp.f32 %v2005_v57  ;;  %v2004_v43 = vadd.f32 1.0, %v2777_v58 }
 0x58e   : > { %v2779_v59 = vpop.eup %2778 }
 0x58f   : > { %v2781_v35 = vpop.eup %2780  ;;  %2031 = vst.msk [vmem:[%s3447_s18 + $0x30] sm:$0xff] %vm2024_vm0, %v2779_v59  ;;  %2794 = vrcp.f32 %v2004_v43 }
 0x590   : > { %v2783_v60 = vpop.eup %2782  ;;  %2034 = vst.msk [vmem:[%s3447_s18 + $0x48] sm:$0xff] %vm2024_vm0, %v2781_v35 }
 0x591   : > { %v2785_v37 = vpop.eup %2784  ;;  %v2007_v61 = vadd.f32 1.0, %v2783_v60 }
 0x592   : > { %v2787_v62 = vpop.eup %2786  ;;  %v2006_v63 = vadd.f32 1.0, %v2785_v37 }
 0x593   : > { %v2789_v1 = vpop.eup %2788  ;;  %2033 = vst.msk [vmem:[%s3447_s18 + $0x40] sm:$0xff] %vm2024_vm0, %v2787_v62  ;;  %2796 = vrcp.f32 %v2007_v61 }
 0x594   : > { %2036 = vst.msk [vmem:[%s3447_s18 + $0x58] sm:$0xff] %vm2024_vm0, %v2789_v1  ;;  %2798 = vrcp.f32 %v2006_v63 }
 0x596   : > { %v2791_v0 = vpop.eup %2790 }
 0x597   : > { %v2793_v2 = vpop.eup %2792  ;;  %2035 = vst.msk [vmem:[%s3447_s18 + $0x50] sm:$0xff] %vm2024_vm0, %v2791_v0 }
 0x598   : > { %2038 = vst.msk [vmem:[%s3447_s18 + $0x68] sm:$0xff] %vm2024_vm0, %v2793_v2 }
 0x599   : > { %v2795_v3 = vpop.eup %2794 }
 0x59a   : > { %2037 = vst.msk [vmem:[%s3447_s18 + $0x60] sm:$0xff] %vm2024_vm0, %v2795_v3 }
 0x59d   : > { %v2797_v39 = vpop.eup %2796 }
 0x59e   : > { %v2799_v4 = vpop.eup %2798  ;;  %2040 = vst.msk [vmem:[%s3447_s18 + $0x78] sm:$0xff] %vm2024_vm0, %v2797_v39 }
 0x59f   : > { %2039 = vst.msk [vmem:[%s3447_s18 + $0x70] sm:$0xff] %vm2024_vm0, %v2799_v4 }
 0x5a0 PF: > { %s25_s15 = sadd.s32 1, %s2822_s15   ;;  %s3511_s29 = smov %s2818_s30 }
 0x5a1   : > { %p22_p6 = scmp.ge.s32.totalorder %s25_s15, 4   ;;  %s3512_s30 = smov %s3514_s16 }
 0x5a3   :  { %24 = sbr.rel (!%p22_p6) target bundleno = 2 (0x2), region = 132 }

</bundles_post_ra>
